<compile_context>
chip_gen: v5e
topology: v5e:2x2
jax: 0.10.0
libtpu: 0.0.40
codegen_flags: <defaults>
</compile_context>

<pallas_src>
import functools
import math

import jax
import jax.numpy as jnp
from jax.experimental import pallas as pl
from jax.experimental.pallas import tpu as pltpu


def _round_up(x, m):
    return (x + m - 1) // m * m


def _cdiv(a, b):
    return (a + b - 1) // b


def _vmem_capacity_bytes():
    """Per-generation VMEM capacity (falls back to the v7x-safe 64 MiB)."""
    try:
        info = pltpu.get_tpu_info()
        cap = getattr(info, "vmem_capacity_bytes", None)
        if cap:
            return int(min(int(cap), 128 * 1024 * 1024))
    except Exception:
        pass
    return 64 * 1024 * 1024


def _cross_attention_kernel(x1_ref, x2_ref, wq_ref, wkv_ref,
                            scores_ref, attn_ref, kv_ref, *, hp, s2_real):
    # Per-grid-step refs:
    #   x1_ref  : (1, TQ, Dp)          x2_ref : (1, S2p, Dp)
    #   wq_ref  : (Dp, Hp)    (Wq^T, 1/sqrt(H) folded in)
    #   wkv_ref : (Dp, 2*Hp)  ([Wk^T | Wv^T])
    #   scores_ref : (1, TQ, S2p)      attn_ref : (1, TQ, Hp)
    #   kv_ref  : VMEM scratch (S2p, 2*Hp), input dtype, persists across qi.
    dtype = x1_ref.dtype

    # --- KV projection hoisted: compute once per batch, reuse across qi. ---
    @pl.when(pl.program_id(1) == 0)
    def _():
        kv_ref[...] = jnp.dot(
            x2_ref[0], wkv_ref[...], preferred_element_type=jnp.float32
        ).astype(dtype)

    x1 = x1_ref[0]                                                  # (TQ, Dp)

    # Q projection; cast back to the input dtype so the attention matmuls run
    # as native-dtype MXU ops (bf16xbf16 with f32 accumulation for bf16 input;
    # no-op cast for f32 input).
    q = jnp.dot(x1, wq_ref[...],
                preferred_element_type=jnp.float32).astype(dtype)   # (TQ, Hp)
    k = kv_ref[:, :hp]                                              # (S2p, Hp)
    v = kv_ref[:, hp:]                                              # (S2p, Hp)

    # scores = q k^T in NT form (contract dim 1 of both; no transposed tile).
    s = jax.lax.dot_general(q, k, (((1,), (1,)), ((), ())),
                            preferred_element_type=jnp.float32)     # (TQ, S2p)

    # Mask padded key columns so the softmax is exact over the real S2.
    if s.shape[-1] != s2_real:
        col = jax.lax.broadcasted_iota(jnp.int32, s.shape, 1)
        s = jnp.where(col < s2_real, s, jnp.float32(-1e30))

    # Numerically stable, exact softmax (returned scores match the reference).
    s_max = jnp.max(s, axis=-1, keepdims=True)
    e = jnp.exp(s - s_max)
    p = e / jnp.sum(e, axis=-1, keepdims=True)                      # (TQ, S2p)

    attn = jnp.dot(p.astype(dtype), v,
                   preferred_element_type=jnp.float32)              # (TQ, Hp)

    scores_ref[0] = p.astype(scores_ref.dtype)
    attn_ref[0] = attn.astype(attn_ref.dtype)


def cross_attention(x1, x2, wq, wk, wv):
    """x1: (B, S1, D), x2: (B, S2, D), w*: (H, D) -> (scores, attention)."""
    B, S1, D = x1.shape
    _, S2, _ = x2.shape
    H = wq.shape[0]
    dtype = x1.dtype
    itm = jnp.dtype(dtype).itemsize

    LANE = 128
    SUB = {4: 8, 2: 16, 1: 32}.get(itm, 8)      # dtype-aware sublane multiple

    Dp = _round_up(D, LANE)
    Hp = _round_up(H, LANE)
    S2p = _round_up(S2, LANE)

    # ------------- VMEM-budget-driven query-tile selection ------------------
    vmem_cap = _vmem_capacity_bytes()
    budget = int(vmem_cap * 0.8)                 # leave room for compiler scratch

    # Exact working-set model (bytes). Invariant inputs are counted double-
    # buffered so the budget is valid even if Buffered(1) is unavailable.
    fixed = (2 * S2p * Dp * itm                  # x2 block
             + 2 * Dp * Hp * itm                 # Wq^T
             + 2 * Dp * 2 * Hp * itm             # [Wk^T | Wv^T]
             + S2p * 2 * Hp * itm                # kv scratch (input dtype)
             + S2p * 2 * Hp * 4)                 # f32 kv projection intermediate
    per_q_row = (2 * Dp * itm                    # x1 (double-buffered)
                 + 2 * S2p * itm                 # scores out (double-buffered)
                 + 2 * Hp * itm                  # attn out (double-buffered)
                 + 4 * Hp * 4                    # q / attn f32 intermediates
                 + 3 * S2p * 4                   # s / e / p f32
                 + S2p * itm)                    # p cast for the PV matmul
    headroom = 1.3
    avail = budget / headroom - fixed
    tq_cap = int(avail // per_q_row) if avail > per_q_row else SUB
    tq_cap = max(SUB, min(512, (tq_cap // SUB) * SUB))
    # TODO(synk): for S2 so large that even TQ==SUB overflows the budget, an
    # online-softmax S2 tiling (with a scores rescale pass) would be required.

    # Minimize query padding: smallest tile with the same number of grid steps.
    n_q_tiles = _cdiv(S1, tq_cap)
    TQ = _round_up(_cdiv(S1, n_q_tiles), SUB)
    S1p = TQ * n_q_tiles

    needed = int(headroom * (fixed + TQ * per_q_row))
    vmem_limit = int(min(max(needed, 32 * 1024 * 1024), int(vmem_cap * 0.9)))

    # ------------- One-time weight / input preparation -----------------------
    scale = jnp.asarray(1.0 / math.sqrt(float(H)), dtype=jnp.float32)
    wq_t = jnp.zeros((Dp, Hp), dtype).at[:D, :H].set(
        (wq.astype(jnp.float32) * scale).T.astype(dtype))
    wkv_t = jnp.zeros((Dp, 2 * Hp), dtype)
    wkv_t = wkv_t.at[:D, :H].set(wk.T.astype(dtype))
    wkv_t = wkv_t.at[:D, Hp:Hp + H].set(wv.T.astype(dtype))

    x1p = jnp.zeros((B, S1p, Dp), dtype).at[:, :S1, :D].set(x1)
    x2p = jnp.zeros((B, S2p, Dp), dtype).at[:, :S2, :D].set(x2)

    # ------------- pallas_call ----------------------------------------------
    kernel = functools.partial(_cross_attention_kernel, hp=Hp, s2_real=S2)
    grid = (B, n_q_tiles)
    # kv scratch carries state across qi -> qi is "arbitrary" (unless trivial);
    # batch stays "parallel" so megacore (v7x) still shards over batches.
    qi_sem = "parallel" if n_q_tiles == 1 else "arbitrary"

    def run(single_buffer_invariants):
        inv = ({"pipeline_mode": pl.Buffered(buffer_count=1)}
               if single_buffer_invariants else {})
        return pl.pallas_call(
            kernel,
            out_shape=[
                jax.ShapeDtypeStruct((B, S1p, S2p), dtype),
                jax.ShapeDtypeStruct((B, S1p, Hp), dtype),
            ],
            grid_spec=pltpu.PrefetchScalarGridSpec(
                num_scalar_prefetch=0,
                grid=grid,
                in_specs=[
                    pl.BlockSpec((1, TQ, Dp), lambda b, qi: (b, qi, 0)),
                    pl.BlockSpec((1, S2p, Dp), lambda b, qi: (b, 0, 0), **inv),
                    pl.BlockSpec((Dp, Hp), lambda b, qi: (0, 0), **inv),
                    pl.BlockSpec((Dp, 2 * Hp), lambda b, qi: (0, 0), **inv),
                ],
                out_specs=[
                    pl.BlockSpec((1, TQ, S2p), lambda b, qi: (b, qi, 0)),
                    pl.BlockSpec((1, TQ, Hp), lambda b, qi: (b, qi, 0)),
                ],
                scratch_shapes=[pltpu.VMEM((S2p, 2 * Hp), dtype)],
            ),
            compiler_params=pltpu.CompilerParams(
                dimension_semantics=("parallel", qi_sem),
                vmem_limit_bytes=vmem_limit,
            ),
        )(x1p, x2p, wq_t, wkv_t)

    try:
        # Single-buffer the grid-invariant inputs when supported.
        scores_p, attn_p = run(True)
    except Exception:
        # Older JAX / unsupported pipeline_mode: fall back to default buffering
        # (the VMEM budget above already assumes double-buffered invariants).
        scores_p, attn_p = run(False)

    return scores_p[:, :S1, :S2], attn_p[:, :S1, :H]


def _reference(x1, x2, wq, wk, wv):
    q = x1 @ wq.T
    k = x2 @ wk.T
    v = x2 @ wv.T
    s = jnp.einsum("bqh,bkh->bqk", q, k) / math.sqrt(wq.shape[0])
    p = jax.nn.softmax(s, axis=-1)
    a = jnp.einsum("bqk,bkh->bqh", p, v)
    return p, a


if __name__ == "__main__":
    B, S1, S2 = 2, 8, 8
    input_dim, hidden_dim = 16, 32

    key = jax.random.PRNGKey(0)
    k1, k2, k3, k4, k5 = jax.random.split(key, 5)

    x1 = jax.random.normal(k1, (B, S1, input_dim), dtype=jnp.float32)
    x2 = jax.random.normal(k2, (B, S2, input_dim), dtype=jnp.float32)

    # Deterministic synthetic weights (nn.Linear weight shape: (hidden, input)).
    bound = 1.0 / math.sqrt(input_dim)
    wq = jax.random.uniform(k3, (hidden_dim, input_dim), jnp.float32, -bound, bound)
    wk = jax.random.uniform(k4, (hidden_dim, input_dim), jnp.float32, -bound, bound)
    wv = jax.random.uniform(k5, (hidden_dim, input_dim), jnp.float32, -bound, bound)

    scores, attention = cross_attention(x1, x2, wq, wk, wv)
    jax.block_until_ready((scores, attention))

    ref_scores, ref_attention = _reference(x1, x2, wq, wk, wv)
    assert scores.shape == (B, S1, S2)
    assert attention.shape == (B, S1, hidden_dim)
    # Exact softmax divide now; residual difference is only MXU accumulation
    # ordering / padding-free matmuls, so the tolerance is tightened.
    assert jnp.allclose(scores, ref_scores, atol=2e-3, rtol=2e-3)
    assert jnp.allclose(attention, ref_attention, atol=2e-3, rtol=2e-3)

    print("KERNEL_OK")
</pallas_src>

<mosaic_0001>
module attributes {stable_mosaic.version = 11 : i64} {
  func.func @_cross_attention_kernel(%arg0: i32, %arg1: i32, %arg2: memref<1x8x128xf32, #tpu.memory_space<vmem>>, %arg3: memref<1x128x128xf32, #tpu.memory_space<vmem>>, %arg4: memref<128x128xf32, #tpu.memory_space<vmem>>, %arg5: memref<128x256xf32, #tpu.memory_space<vmem>>, %arg6: memref<1x8x128xf32, #tpu.memory_space<vmem>>, %arg7: memref<1x8x128xf32, #tpu.memory_space<vmem>>, %arg8: memref<128x256xf32, #tpu.memory_space<vmem>>) attributes {dimension_semantics = [#tpu.dimension_semantics<parallel>, #tpu.dimension_semantics<parallel>], iteration_bounds = array<i64: 2, 1>, scalar_prefetch = 0 : i64, scratch_operands = 1 : i64, tpu.core_type = #tpu.core_type<tc>, window_params = [{transform_indices = @transform_0, window_bounds = array<i64: 1, 8, 128>}, {pipeline_mode = #tpu.pipeline_mode<synchronous>, transform_indices = @transform_1, window_bounds = array<i64: 1, 128, 128>}, {pipeline_mode = #tpu.pipeline_mode<synchronous>, transform_indices = @transform_2, window_bounds = array<i64: 128, 128>}, {pipeline_mode = #tpu.pipeline_mode<synchronous>, transform_indices = @transform_3, window_bounds = array<i64: 128, 256>}, {transform_indices = @transform_4, window_bounds = array<i64: 1, 8, 128>}, {transform_indices = @transform_5, window_bounds = array<i64: 1, 8, 128>}]} {
    %c0_i32 = arith.constant 0 : i32
    %0 = arith.cmpi eq, %arg1, %c0_i32 : i32
    %1 = arith.extui %0 : i1 to i32
    %c0_i32_0 = arith.constant 0 : i32
    %2 = arith.cmpi ne, %1, %c0_i32_0 : i32
    scf.if %2 {
      %c0_19 = arith.constant 0 : index
      %c0_20 = arith.constant 0 : index
      %c0_21 = arith.constant 0 : index
      %31 = vector.load %arg3[%c0_19, %c0_20, %c0_21] : memref<1x128x128xf32, #tpu.memory_space<vmem>>, vector<1x128x128xf32>
      %32 = vector.shape_cast %31 : vector<1x128x128xf32> to vector<128x128xf32>
      %c0_22 = arith.constant 0 : index
      %c0_23 = arith.constant 0 : index
      %33 = vector.load %arg5[%c0_22, %c0_23] : memref<128x256xf32, #tpu.memory_space<vmem>>, vector<128x256xf32>
      %cst_24 = arith.constant dense<0.000000e+00> : vector<128x256xf32>
      %34 = tpu.matmul %32, %33, %cst_24 {dimension_numbers = #tpu.dot_dimension_numbers<[1], [0], [0], [1], [0, 0, 1, 1], [], []>} : vector<128x128xf32>, vector<128x256xf32>, vector<128x256xf32> -> vector<128x256xf32>
      %c0_25 = arith.constant 0 : index
      %c0_26 = arith.constant 0 : index
      %35 = vector.load %arg8[%c0_25, %c0_26] : memref<128x256xf32, #tpu.memory_space<vmem>>, vector<128x256xf32>
      tpu.vector_store %arg8[%c0_25, %c0_26], %34 {strides = array<i32>} : memref<128x256xf32, #tpu.memory_space<vmem>>, vector<128x256xf32>,
    } else {
    }
    %c0 = arith.constant 0 : index
    %c0_1 = arith.constant 0 : index
    %c0_2 = arith.constant 0 : index
    %3 = vector.load %arg2[%c0, %c0_1, %c0_2] : memref<1x8x128xf32, #tpu.memory_space<vmem>>, vector<1x8x128xf32>
    %4 = vector.shape_cast %3 : vector<1x8x128xf32> to vector<8x128xf32>
    %c0_3 = arith.constant 0 : index
    %c0_4 = arith.constant 0 : index
    %5 = vector.load %arg4[%c0_3, %c0_4] : memref<128x128xf32, #tpu.memory_space<vmem>>, vector<128x128xf32>
    %cst = arith.constant dense<0.000000e+00> : vector<8x128xf32>
    %6 = tpu.matmul %4, %5, %cst {dimension_numbers = #tpu.dot_dimension_numbers<[1], [0], [0], [1], [0, 0, 1, 1], [], []>} : vector<8x128xf32>, vector<128x128xf32>, vector<8x128xf32> -> vector<8x128xf32>
    %c0_5 = arith.constant 0 : index
    %c0_6 = arith.constant 0 : index
    %7 = vector.load %arg8[%c0_5, %c0_6] : memref<128x256xf32, #tpu.memory_space<vmem>>, vector<128x128xf32>
    %c0_7 = arith.constant 0 : index
    %c128 = arith.constant 128 : index
    %8 = vector.load %arg8[%c0_7, %c128] : memref<128x256xf32, #tpu.memory_space<vmem>>, vector<128x128xf32>
    %cst_8 = arith.constant dense<0.000000e+00> : vector<8x128xf32>
    %9 = tpu.matmul %6, %7, %cst_8 {dimension_numbers = #tpu.dot_dimension_numbers<[1], [1], [0], [0], [0, 0, 1, 0], [], []>} : vector<8x128xf32>, vector<128x128xf32>, vector<8x128xf32> -> vector<8x128xf32>
    %10 = tpu.iota {dimensions = array<i32: 1>} : vector<8x128xi32>
    %c8_i32 = arith.constant 8 : i32
    %11 = vector.broadcast %c8_i32 : i32 to vector<8x128xi32>
    %12 = arith.cmpi slt, %10, %11 : vector<8x128xi32>
    %cst_9 = arith.constant -1.000000e+30 : f32
    %13 = vector.broadcast %cst_9 : f32 to vector<8x128xf32>
    %14 = arith.select %12, %9, %13 : vector<8x128xi1>, vector<8x128xf32>
    %cst_10 = arith.constant dense<0xFF800000> : vector<8xf32>
    %15 = vector.multi_reduction <maximumf>, %14, %cst_10 [1] : vector<8x128xf32> to vector<8xf32>
    %16 = vector.shape_cast %15 : vector<8xf32> to vector<8x1xf32>
    %17 = vector.broadcast %16 : vector<8x1xf32> to vector<8x128xf32>
    %18 = arith.subf %14, %17 : vector<8x128xf32>
    %19 = math.exp %18 : vector<8x128xf32>
    %cst_11 = arith.constant dense<0.000000e+00> : vector<8xf32>
    %20 = vector.multi_reduction <add>, %19, %cst_11 [1] : vector<8x128xf32> to vector<8xf32>
    %21 = vector.shape_cast %20 : vector<8xf32> to vector<8x1xf32>
    %22 = vector.broadcast %21 : vector<8x1xf32> to vector<8x128xf32>
    %23 = arith.divf %19, %22 : vector<8x128xf32>
    %cst_12 = arith.constant dense<0.000000e+00> : vector<8x128xf32>
    %24 = tpu.matmul %23, %8, %cst_12 {dimension_numbers = #tpu.dot_dimension_numbers<[1], [0], [0], [1], [0, 0, 1, 1], [], []>} : vector<8x128xf32>, vector<128x128xf32>, vector<8x128xf32> -> vector<8x128xf32>
    %c0_13 = arith.constant 0 : index
    %c0_14 = arith.constant 0 : index
    %c0_15 = arith.constant 0 : index
    %25 = vector.load %arg6[%c0_13, %c0_14, %c0_15] : memref<1x8x128xf32, #tpu.memory_space<vmem>>, vector<1x8x128xf32>
    %26 = vector.shape_cast %25 : vector<1x8x128xf32> to vector<8x128xf32>
    %27 = vector.shape_cast %23 : vector<8x128xf32> to vector<1x8x128xf32>
    tpu.vector_store %arg6[%c0_13, %c0_14, %c0_15], %27 {strides = array<i32>} : memref<1x8x128xf32, #tpu.memory_space<vmem>>, vector<1x8x128xf32>,
    %c0_16 = arith.constant 0 : index
    %c0_17 = arith.constant 0 : index
    %c0_18 = arith.constant 0 : index
    %28 = vector.load %arg7[%c0_16, %c0_17, %c0_18] : memref<1x8x128xf32, #tpu.memory_space<vmem>>, vector<1x8x128xf32>
    %29 = vector.shape_cast %28 : vector<1x8x128xf32> to vector<8x128xf32>
    %30 = vector.shape_cast %24 : vector<8x128xf32> to vector<1x8x128xf32>
    tpu.vector_store %arg7[%c0_16, %c0_17, %c0_18], %30 {strides = array<i32>} : memref<1x8x128xf32, #tpu.memory_space<vmem>>, vector<1x8x128xf32>,
    return
  }
  func.func @transform_0(%arg0: i32, %arg1: i32) -> (i32, i32, i32) {
    %c0_i32 = arith.constant 0 : i32
    %c0_i32_0 = arith.constant 0 : i32
    return %arg0, %arg1, %c0_i32 : i32, i32, i32
  }
  func.func @transform_1(%arg0: i32, %arg1: i32) -> (i32, i32, i32) {
    %c0_i32 = arith.constant 0 : i32
    %c0_i32_0 = arith.constant 0 : i32
    %c0_i32_1 = arith.constant 0 : i32
    return %arg0, %c0_i32, %c0_i32_0 : i32, i32, i32
  }
  func.func @transform_2(%arg0: i32, %arg1: i32) -> (i32, i32) {
    %c0_i32 = arith.constant 0 : i32
    %c0_i32_0 = arith.constant 0 : i32
    %c0_i32_1 = arith.constant 0 : i32
    return %c0_i32, %c0_i32_0 : i32, i32
  }
  func.func @transform_3(%arg0: i32, %arg1: i32) -> (i32, i32) {
    %c0_i32 = arith.constant 0 : i32
    %c0_i32_0 = arith.constant 0 : i32
    %c0_i32_1 = arith.constant 0 : i32
    return %c0_i32, %c0_i32_0 : i32, i32
  }
  func.func @transform_4(%arg0: i32, %arg1: i32) -> (i32, i32, i32) {
    %c0_i32 = arith.constant 0 : i32
    %c0_i32_0 = arith.constant 0 : i32
    return %arg0, %arg1, %c0_i32 : i32, i32, i32
  }
  func.func @transform_5(%arg0: i32, %arg1: i32) -> (i32, i32, i32) {
    %c0_i32 = arith.constant 0 : i32
    %c0_i32_0 = arith.constant 0 : i32
    return %arg0, %arg1, %c0_i32 : i32, i32, i32
  }
}

module attributes {stable_mosaic.version = 11 : i64} {
  func.func @_cross_attention_kernel(%arg0: i32, %arg1: i32, %arg2: memref<1x8x128xf32, #tpu.memory_space<vmem>>, %arg3: memref<1x128x128xf32, #tpu.memory_space<vmem>>, %arg4: memref<128x128xf32, #tpu.memory_space<vmem>>, %arg5: memref<128x256xf32, #tpu.memory_space<vmem>>, %arg6: memref<1x8x128xf32, #tpu.memory_space<vmem>>, %arg7: memref<1x8x128xf32, #tpu.memory_space<vmem>>, %arg8: memref<128x256xf32, #tpu.memory_space<vmem>>) attributes {dimension_semantics = [#tpu.dimension_semantics<parallel>, #tpu.dimension_semantics<parallel>], iteration_bounds = array<i64: 2, 1>, scalar_prefetch = 0 : i64, scratch_operands = 1 : i64, tpu.core_type = #tpu.core_type<tc>, window_params = [{transform_indices = @transform_0, window_bounds = array<i64: 1, 8, 128>}, {transform_indices = @transform_1, window_bounds = array<i64: 1, 128, 128>}, {pipeline_mode = #tpu.pipeline_mode<synchronous>, transform_indices = @transform_2, window_bounds = array<i64: 128, 128>}, {pipeline_mode = #tpu.pipeline_mode<synchronous>, transform_indices = @transform_3, window_bounds = array<i64: 128, 256>}, {transform_indices = @transform_4, window_bounds = array<i64: 1, 8, 128>}, {transform_indices = @transform_5, window_bounds = array<i64: 1, 8, 128>}]} {
    %c0_i32 = arith.constant 0 : i32
    %0 = arith.cmpi eq, %arg1, %c0_i32 : i32
    %1 = arith.extui %0 : i1 to i32
    %c0_i32_0 = arith.constant 0 : i32
    %2 = arith.cmpi ne, %1, %c0_i32_0 : i32
    scf.if %2 {
      %c0_19 = arith.constant 0 : index
      %c0_20 = arith.constant 0 : index
      %c0_21 = arith.constant 0 : index
      %31 = vector.load %arg3[%c0_19, %c0_20, %c0_21] : memref<1x128x128xf32, #tpu.memory_space<vmem>>, vector<1x128x128xf32>
      %32 = vector.shape_cast %31 : vector<1x128x128xf32> to vector<128x128xf32>
      %c0_22 = arith.constant 0 : index
      %c0_23 = arith.constant 0 : index
      %33 = vector.load %arg5[%c0_22, %c0_23] : memref<128x256xf32, #tpu.memory_space<vmem>>, vector<128x256xf32>
      %cst_24 = arith.constant dense<0.000000e+00> : vector<128x256xf32>
      %34 = tpu.matmul %32, %33, %cst_24 {dimension_numbers = #tpu.dot_dimension_numbers<[1], [0], [0], [1], [0, 0, 1, 1], [], []>} : vector<128x128xf32>, vector<128x256xf32>, vector<128x256xf32> -> vector<128x256xf32>
      %c0_25 = arith.constant 0 : index
      %c0_26 = arith.constant 0 : index
      %35 = vector.load %arg8[%c0_25, %c0_26] : memref<128x256xf32, #tpu.memory_space<vmem>>, vector<128x256xf32>
      tpu.vector_store %arg8[%c0_25, %c0_26], %34 {strides = array<i32>} : memref<128x256xf32, #tpu.memory_space<vmem>>, vector<128x256xf32>,
    } else {
    }
    %c0 = arith.constant 0 : index
    %c0_1 = arith.constant 0 : index
    %c0_2 = arith.constant 0 : index
    %3 = vector.load %arg2[%c0, %c0_1, %c0_2] : memref<1x8x128xf32, #tpu.memory_space<vmem>>, vector<1x8x128xf32>
    %4 = vector.shape_cast %3 : vector<1x8x128xf32> to vector<8x128xf32>
    %c0_3 = arith.constant 0 : index
    %c0_4 = arith.constant 0 : index
    %5 = vector.load %arg4[%c0_3, %c0_4] : memref<128x128xf32, #tpu.memory_space<vmem>>, vector<128x128xf32>
    %cst = arith.constant dense<0.000000e+00> : vector<8x128xf32>
    %6 = tpu.matmul %4, %5, %cst {dimension_numbers = #tpu.dot_dimension_numbers<[1], [0], [0], [1], [0, 0, 1, 1], [], []>} : vector<8x128xf32>, vector<128x128xf32>, vector<8x128xf32> -> vector<8x128xf32>
    %c0_5 = arith.constant 0 : index
    %c0_6 = arith.constant 0 : index
    %7 = vector.load %arg8[%c0_5, %c0_6] : memref<128x256xf32, #tpu.memory_space<vmem>>, vector<128x128xf32>
    %c0_7 = arith.constant 0 : index
    %c128 = arith.constant 128 : index
    %8 = vector.load %arg8[%c0_7, %c128] : memref<128x256xf32, #tpu.memory_space<vmem>>, vector<128x128xf32>
    %cst_8 = arith.constant dense<0.000000e+00> : vector<8x128xf32>
    %9 = tpu.matmul %6, %7, %cst_8 {dimension_numbers = #tpu.dot_dimension_numbers<[1], [1], [0], [0], [0, 0, 1, 0], [], []>} : vector<8x128xf32>, vector<128x128xf32>, vector<8x128xf32> -> vector<8x128xf32>
    %10 = tpu.iota {dimensions = array<i32: 1>} : vector<8x128xi32>
    %c8_i32 = arith.constant 8 : i32
    %11 = vector.broadcast %c8_i32 : i32 to vector<8x128xi32>
    %12 = arith.cmpi slt, %10, %11 : vector<8x128xi32>
    %cst_9 = arith.constant -1.000000e+30 : f32
    %13 = vector.broadcast %cst_9 : f32 to vector<8x128xf32>
    %14 = arith.select %12, %9, %13 : vector<8x128xi1>, vector<8x128xf32>
    %cst_10 = arith.constant dense<0xFF800000> : vector<8xf32>
    %15 = vector.multi_reduction <maximumf>, %14, %cst_10 [1] : vector<8x128xf32> to vector<8xf32>
    %16 = vector.shape_cast %15 : vector<8xf32> to vector<8x1xf32>
    %17 = vector.broadcast %16 : vector<8x1xf32> to vector<8x128xf32>
    %18 = arith.subf %14, %17 : vector<8x128xf32>
    %19 = math.exp %18 : vector<8x128xf32>
    %cst_11 = arith.constant dense<0.000000e+00> : vector<8xf32>
    %20 = vector.multi_reduction <add>, %19, %cst_11 [1] : vector<8x128xf32> to vector<8xf32>
    %21 = vector.shape_cast %20 : vector<8xf32> to vector<8x1xf32>
    %22 = vector.broadcast %21 : vector<8x1xf32> to vector<8x128xf32>
    %23 = arith.divf %19, %22 : vector<8x128xf32>
    %cst_12 = arith.constant dense<0.000000e+00> : vector<8x128xf32>
    %24 = tpu.matmul %23, %8, %cst_12 {dimension_numbers = #tpu.dot_dimension_numbers<[1], [0], [0], [1], [0, 0, 1, 1], [], []>} : vector<8x128xf32>, vector<128x128xf32>, vector<8x128xf32> -> vector<8x128xf32>
    %c0_13 = arith.constant 0 : index
    %c0_14 = arith.constant 0 : index
    %c0_15 = arith.constant 0 : index
    %25 = vector.load %arg6[%c0_13, %c0_14, %c0_15] : memref<1x8x128xf32, #tpu.memory_space<vmem>>, vector<1x8x128xf32>
    %26 = vector.shape_cast %25 : vector<1x8x128xf32> to vector<8x128xf32>
    %27 = vector.shape_cast %23 : vector<8x128xf32> to vector<1x8x128xf32>
    tpu.vector_store %arg6[%c0_13, %c0_14, %c0_15], %27 {strides = array<i32>} : memref<1x8x128xf32, #tpu.memory_space<vmem>>, vector<1x8x128xf32>,
    %c0_16 = arith.constant 0 : index
    %c0_17 = arith.constant 0 : index
    %c0_18 = arith.constant 0 : index
    %28 = vector.load %arg7[%c0_16, %c0_17, %c0_18] : memref<1x8x128xf32, #tpu.memory_space<vmem>>, vector<1x8x128xf32>
    %29 = vector.shape_cast %28 : vector<1x8x128xf32> to vector<8x128xf32>
    %30 = vector.shape_cast %24 : vector<8x128xf32> to vector<1x8x128xf32>
    tpu.vector_store %arg7[%c0_16, %c0_17, %c0_18], %30 {strides = array<i32>} : memref<1x8x128xf32, #tpu.memory_space<vmem>>, vector<1x8x128xf32>,
    return
  }
  func.func @transform_0(%arg0: i32, %arg1: i32) -> (i32, i32, i32) {
    %c0_i32 = arith.constant 0 : i32
    %c0_i32_0 = arith.constant 0 : i32
    return %arg0, %arg1, %c0_i32 : i32, i32, i32
  }
  func.func @transform_1(%arg0: i32, %arg1: i32) -> (i32, i32, i32) {
    %c0_i32 = arith.constant 0 : i32
    %c0_i32_0 = arith.constant 0 : i32
    %c0_i32_1 = arith.constant 0 : i32
    return %arg0, %c0_i32, %c0_i32_0 : i32, i32, i32
  }
  func.func @transform_2(%arg0: i32, %arg1: i32) -> (i32, i32) {
    %c0_i32 = arith.constant 0 : i32
    %c0_i32_0 = arith.constant 0 : i32
    %c0_i32_1 = arith.constant 0 : i32
    return %c0_i32, %c0_i32_0 : i32, i32
  }
  func.func @transform_3(%arg0: i32, %arg1: i32) -> (i32, i32) {
    %c0_i32 = arith.constant 0 : i32
    %c0_i32_0 = arith.constant 0 : i32
    %c0_i32_1 = arith.constant 0 : i32
    return %c0_i32, %c0_i32_0 : i32, i32
  }
  func.func @transform_4(%arg0: i32, %arg1: i32) -> (i32, i32, i32) {
    %c0_i32 = arith.constant 0 : i32
    %c0_i32_0 = arith.constant 0 : i32
    return %arg0, %arg1, %c0_i32 : i32, i32, i32
  }
  func.func @transform_5(%arg0: i32, %arg1: i32) -> (i32, i32, i32) {
    %c0_i32 = arith.constant 0 : i32
    %c0_i32_0 = arith.constant 0 : i32
    return %arg0, %arg1, %c0_i32 : i32, i32, i32
  }
}

</mosaic_0001>

<bundles_post_ra>
// kernel: tpu_custom_call.1
= control target key start
LH: loop header
LB: loop body
LE: loop exit
PB: predicated region body
PF: predicated region fallthrough
CT: control target
= control target key end

     0   :  { %s1569_s0 = inlined_call_operand.hbm [shape: f32[2,8,128], index: 0, kind: input, shape index: {}]   ;;  %s1570_s1 = inlined_call_operand.hbm [shape: f32[2,128,128], index: 1, kind: input, shape index: {}]   ;;  %s1571_s2 = inlined_call_operand.hbm [shape: f32[128,128], index: 2, kind: input, shape index: {}]   ;;  %s1572_s3 = inlined_call_operand.hbm [shape: f32[128,256], index: 3, kind: input, shape index: {}]   ;;  %s1573_s4 = inlined_call_operand.hbm [shape: f32[2,8,128], index: 4, kind: output, shape index: {0}]   ;;  %s1574_s5 = inlined_call_operand.hbm [shape: f32[2,8,128], index: 5, kind: output, shape index: {1}]  }
   0x1   :  { %1575 = sst [smem:[#allocation20_spill]] %s1570_s1 }
   0x2   :  { %11 = vsyncpa [#allocation4], 0 }
   0x3   :  { %13 = vsyncpa [#allocation4 + $0x1], 0 }
   0x4   :  { %14 = vsyncpa [#allocation7], 0 }
   0x5   :  { %15 = vsyncpa [#allocation10], 0 }
   0x6   :  { %16 = vsyncpa [#allocation5], 0 }
   0x7   :  { %18 = vsyncpa [#allocation5 + $0x1], 0 }
   0x8   :  { %19 = vsyncpa [#allocation13], 0 }
   0x9   :  { %21 = vsyncpa [#allocation13 + $0x1], 0  ;;  %s1289_s18 = smov 0   ;;  %s1291_s19 = smov 0  }
   0xa   :  { %s1293_s20 = smov 0   ;;  %s1295_s21 = smov 0  }
   0xb   :  { %s1297_s22 = smov 0   ;;  %s1299_s23 = smov 0  }
   0xc LB: > { %s863_s24 = sadd.s32 4294967295, %s1250_s23   ;;  %s864_s25 = sadd.s32 4294967294, %s1250_s23   ;;  %s1250_s23 = sphi %s1299_s23, %s27_s23   ;;  %s1246_s22 = sphi %s1297_s22, %s1589_s22   ;;  %s1242_s21 = sphi %s1295_s21, %s1588_s21   ;;  %s1238_s20 = sphi %s1293_s20, %s1587_s20   ;;  %s1234_s19 = sphi %s1291_s19, %s1586_s19   ;;  %s1230_s18 = sphi %s1289_s18, %s1585_s18  }
   0xd   : > { %p61_p0 = scmp.ne.s32.totalorder %s1234_s19, %s1230_s18  ;;  %p1325_p1 = scmp.eq.s32.totalorder %s863_s24, 0 }
   0xe   : > { %p161_p2 = scmp.eq.s32.totalorder %s864_s25, 1  ;;  %p865_p3 = scmp.ge.s32.totalorder %s1250_s23, 1 }
   0xf   : > { %p1332_p4 = por %p1325_p1, %p61_p0  ;;  %p196_p5 = scmp.lt.s32.totalorder %s1250_s23, 3 }
  0x10   : > { %p1337_p6 = por %p161_p2, %p61_p0  ;;  %s885_s29 = sshll.u32 %s1242_s21, 7 }
  0x11   : > { %p1342_p7 = pnand %p865_p3, %p196_p5  ;;  %s1580_s1 = sld [smem:[#allocation20_spill]] }
  0x12   : > { %s1252_s10 = smov [#allocation6]  }
  0x13   : > { %p918_p8 = pneg %p1342_p7  ;;  %s212_s11 = sshll.u32 %s1252_s10, 4  ;;  %s213_s11 = int_to_ptr.vmem [resolvable:$true] %s212_s11 }
  0x15   : > { %p1353_p9 = pnand %p918_p8, %p1332_p4  ;;  %p1359_p10 = pnand %p918_p8, %p1325_p1 }
  0x17   : > { %s209_s8 = scalar_lea.hbm %s1580_s1, %s885_s29  ;;  %p1008_p12 = pneg %p1353_p9 }
  0x18   : > { %s210_s9 = sshll.u32 %s209_s8, 4  ;;  %s1011_s25 = scalar_lea.hbm %s1580_s1, 256  ;;  %s211_s9 = int_to_ptr.hbm [resolvable:$true] %s210_s9 }
  0x19   : > { %s1004_s14 = sshra.s32 %s211_s9, 4  ;;  %s1005_s14 = int_to_ptr.hbm [resolvable:$true] %s1004_s14 }
  0x1a   : > { %s1006_s15 = scalar_lea.hbm %s1005_s14, 128  ;;  %p1012_p2 = scmp.lt.s32.totalorder %s1005_s14, %s1580_s1 }
  0x1b   : > { %p1007_p11 = scmp.ne.s32.totalorder %s1005_s14, %s1006_s15  ;;  %p1013_p3 = scmp.lt.s32.totalorder %s1011_s25, %s1006_s15 }
  0x1d   : > { %p1009_p13 = pnand %p1008_p12, %p1007_p11  ;;  %p1014_p5 = por %p1013_p3, %p1012_p2 }
  0x1f   : > { %p1010_p0 = pneg %p1009_p13 }
  0x21   : > { %p1015_p8 = pnand %p1014_p5, %p1010_p0 }
  0x23   : > { %1018 = shalt.err (!%p1015_p8)
}
  0x24   : > { %s1253_s7 = smov 128   ;;  %s1254_s8 = smov 8  }
  0x25   : > { %921 = dma.hbm_to_vmem [thread:$0]  (!%p1353_p9), %s211_s9, 2048, %s213_s11, [#allocation7], %s1253_s7, %s1253_s7, %s1254_s8  }
  0x26   : > { %p870_p11 = scmp.ge.s32.totalorder %s1250_s23, 2  ;;  %s224_s17 = sshll.u32 %s1571_s2, 4  ;;  %s225_s17 = int_to_ptr.hbm [resolvable:$true] %s224_s17 }
  0x27   : > { %s1255_s14 = smov [#allocation8]   ;;  %s238_s12 = sshll.u32 %s1572_s3, 4  ;;  %s239_s12 = int_to_ptr.hbm [resolvable:$true] %s238_s12 }
  0x28   : > { %s226_s15 = sshll.u32 %s1255_s14, 4  ;;  %s1256_s9 = smov [#allocation9]   ;;  %s227_s15 = int_to_ptr.vmem [resolvable:$true] %s226_s15 }
  0x29   : > { %924 = dma.hbm_to_vmem [thread:$0]  (!%p1359_p10), %s225_s17, 2048, %s227_s15, [#allocation7], %s1253_s7, %s1253_s7, %s1254_s8  }
  0x2a   : > { %s240_s11 = sshll.u32 %s1256_s9, 4  ;;  %s1257_s6 = smov 256   ;;  %s241_s11 = int_to_ptr.vmem [resolvable:$true] %s240_s11 }
  0x2b   : > { %s1258_s10 = smov 16   ;;  %s39_s16 = sadd.s32 1, %s1246_s22 }
  0x2c   : > { %927 = dma.hbm_to_vmem [thread:$0]  (!%p1359_p10), %s239_s12, 4096, %s241_s11, [#allocation10], %s1257_s6, %s1257_s6, %s1258_s10  }
  0x2d   : > { %s48_s14 = sadd.s32 1, %s1238_s20  ;;  %p41_p9 = scmp.ge.s32.totalorder %s39_s16, 2 }
  0x2e   : > { %p55_p12 = scmp.ne.s32.totalorder %s1238_s20, %s1234_s19  ;;  %p56_p13 = scmp.eq.s32.totalorder %s1250_s23, 0 }
  0x2f   : > { %p155_p0 = scmp.eq.s32.totalorder %s863_s24, 1  ;;  %s1591_s16 = smov (%p41_p9, %s39_s16), 0 }
  0x30   : > { %p1393_p2 = por %p56_p13, %p55_p12  ;;  %s43_s8 = ssub.s32 %s1246_s22, %s1591_s16 }
  0x31   : > { %p1397_p3 = por %p155_p0, %p55_p12  ;;  %p941_p10 = scmp.lt.s32.totalorder %s1250_s23, 2 }
  0x32   : > { %p46_p5 = scmp.eq.s32.totalorder %s43_s8, 0  ;;  %s254_s17 = sand.u32 1, %s1238_s20  }
  0x33   : > { %s871_s15 = sshll.u32 %s254_s17, 3  ;;  %s872_s24 = sshll.u32 %s1246_s22, 3 }
  0x34   : > { %s1406_s25 = scalar_select %p46_p5, %s1238_s20, %s48_s14  }
  0x35   : > { %s263_s9 = scalar_lea.hbm %s1569_s0, %s872_s24  ;;  %s258_s11 = scalar_lea.vmem [#allocation3], %s871_s15 }
  0x36   : > { %s267_s6 = sshll.u32 %s258_s11, 4  ;;  %s265_s10 = sshll.u32 %s263_s9, 4  ;;  %s268_s6 = int_to_ptr.vmem [resolvable:$true] %s267_s6  ;;  %s266_s10 = int_to_ptr.hbm [resolvable:$true] %s265_s10 }
  0x37   : > { %p929_p8 = pnand %p941_p10, %p1393_p2  ;;  %s255_s1 = scalar_lea.sflag [#allocation4], %s254_s17 }
  0x38   : > { %276 = sbr.rel (%p1342_p7) target bundleno = 879 (0x36f), region = 36  ;;  %s1417_s14 = sand.u32 (!%p1342_p7), 1, %s1234_s19  }
  0x39   : > { %931 = dma.hbm_to_vmem [thread:$0]  (!%p929_p8), %s266_s10, 128, %s268_s6, %s255_s1  }
  0x3a   : > { %s1420_s8 = sshll.u32 (!%p1342_p7), %s1417_s14, 3  ;;  %s279_s15 = scalar_lea.sflag (!%p1342_p7), [#allocation4], %s1417_s14 }
  0x3b   : > { %s282_s24 = scalar_lea.vmem (!%p1342_p7), [#allocation3], %s1420_s8 }
  0x3d   : > { %1205 = dma.done.wait (%p1332_p4), %s279_s15, 128  }
  0x3e   : > { %1207 = vsyncadd (%p1332_p4), %s279_s15, 4294967168 }
  0x3f   : > { %1209 = dma.done.wait (%p1332_p4), [#allocation7], 2048  }
  0x40   : > { %1211 = vsyncadd (%p1332_p4), [#allocation7], 4294965248 }
  0x41   : > { %1213 = dma.done.wait (%p1325_p1), [#allocation7], 2048  }
  0x42   : > { %1215 = vsyncadd (%p1325_p1), [#allocation7], 4294965248 }
  0x43   : > { %1217 = dma.done.wait (%p1325_p1), [#allocation10], 4096  }
  0x44   : > { %1219 = vsyncadd (%p1325_p1), [#allocation10], 4294963200  ;;  %v380_v0 = vld [vmem:[#allocation9 + $0xf0] sm:$0xff]  ;;  %v378_v1 = vld [vmem:[#allocation9 + $0xe0] sm:$0xff]  ;;  %s322_s1 = scalar_lea.vmem [#allocation11], %s1420_s8  ;;  %s881_s26 = sshll.u32 %s1242_s21, 3 }
  0x45   : > { %382 = vmatpush.msra.mxu0 %v380_v0  ;;  %886 = vmatpush.msra.mxu2 %v380_v0  ;;  %v376_v2 = vld [vmem:[#allocation9 + $0xd0] sm:$0xff]  ;;  %v374_v3 = vld [vmem:[#allocation9 + $0xc0] sm:$0xff]  ;;  %v1442_v17 = vld [vmem:[#allocation6 + $0x58] sm:$0xff]  ;;  %s698_s7 = scalar_lea.hbm %s1573_s4, %s881_s26  ;;  %s700_s17 = sshll.u32 %s322_s1, 4  ;;  %s701_s17 = int_to_ptr.vmem [resolvable:$true] %s700_s17 }
  0x46   : > { %v372_v4 = vld [vmem:[#allocation9 + $0xb0] sm:$0xff]  ;;  %v370_v5 = vld [vmem:[#allocation9 + $0xa0] sm:$0xff]  ;;  %v1446_v18 = vld [vmem:[#allocation6 + $0x8] sm:$0xff]  ;;  %s702_s29 = sshll.u32 %s698_s7, 4  ;;  %s682_s12 = scalar_lea.sflag [#allocation5], %s1417_s14  ;;  %s703_s29 = int_to_ptr.hbm [resolvable:$true] %s702_s29 }
  0x47   : > { %383 = vmatpush.msra.mxu0 %v378_v1  ;;  %887 = vmatpush.msra.mxu2 %v378_v1  ;;  %v368_v6 = vld [vmem:[#allocation9 + $0x90] sm:$0xff]  ;;  %v366_v7 = vld [vmem:[#allocation9 + $0x80] sm:$0xff]  ;;  %v1454_v21 = vld [vmem:[#allocation6 + $0x68] sm:$0xff]  ;;  %s1138_s9 = sshra.s32 %s703_s29, 4  ;;  %s1144_s21 = scalar_lea.hbm %s1573_s4, 16  ;;  %s1139_s9 = int_to_ptr.hbm [resolvable:$true] %s1138_s9 }
  0x48   : > { %v364_v8 = vld [vmem:[#allocation9 + $0x70] sm:$0xff]  ;;  %v362_v9 = vld [vmem:[#allocation9 + $0x60] sm:$0xff]  ;;  %v1458_v22 = vld [vmem:[#allocation6 + $0x18] sm:$0xff]  ;;  %s1140_s11 = scalar_lea.hbm %s1139_s9, 8  ;;  %p1145_p9 = scmp.lt.s32.totalorder %s1139_s9, %s1573_s4 }
  0x49   : > { %384 = vmatpush.msra.mxu0 %v376_v2  ;;  %888 = vmatpush.msra.mxu2 %v376_v2  ;;  %v360_v10 = vld [vmem:[#allocation9 + $0x50] sm:$0xff]  ;;  %v358_v11 = vld [vmem:[#allocation9 + $0x40] sm:$0xff]  ;;  %v1466_v25 = vld [vmem:[#allocation6 + $0x78] sm:$0xff]  ;;  %p1141_p1 = scmp.ne.s32.totalorder %s1139_s9, %s1140_s11  ;;  %p1146_p12 = scmp.lt.s32.totalorder %s1144_s21, %s1140_s11 }
  0x4a   : > { %v356_v12 = vld [vmem:[#allocation9 + $0x30] sm:$0xff]  ;;  %v354_v13 = vld [vmem:[#allocation9 + $0x20] sm:$0xff]  ;;  %v1470_v26 = vld [vmem:[#allocation6 + $0x28] sm:$0xff] }
  0x4b   : > { %385 = vmatpush.msra.mxu0 %v374_v3  ;;  %889 = vmatpush.msra.mxu2 %v374_v3  ;;  %v352_v14 = vld [vmem:[#allocation9 + $0x10] sm:$0xff]  ;;  %v350_v15 = vld [vmem:[#allocation9] sm:$0xff]  ;;  %v560_v27 = vld [vmem:[#allocation8 + $0x78] sm:$0xff]  ;;  %p1142_p4 = pnand %p1141_p1, %p1397_p3  ;;  %p1147_p13 = por %p1146_p12, %p1145_p9 }
  0x4c   : > { %v1440_v16 = vld [vmem:[#allocation6] sm:$0xff]  ;;  %v1452_v20 = vld [vmem:[#allocation6 + $0x10] sm:$0xff]  ;;  %v558_v30 = vld [vmem:[#allocation8 + $0x68] sm:$0xff] }
  0x4d   : > { %386 = vmatpush.msra.mxu0 %v372_v4  ;;  %890 = vmatpush.msra.mxu2 %v372_v4  ;;  %v1448_v19 = vld [vmem:[#allocation6 + $0x60] sm:$0xff]  ;;  %v1460_v23 = vld [vmem:[#allocation6 + $0x70] sm:$0xff]  ;;  %v556_v32 = vld [vmem:[#allocation8 + $0x58] sm:$0xff]  ;;  %p1143_p7 = pneg %p1142_p4 }
  0x4e   : > { %v1464_v24 = vld [vmem:[#allocation6 + $0x20] sm:$0xff]  ;;  %v1473_v28 = vld [vmem:[#allocation6 + $0x30] sm:$0xff]  ;;  %v1476_v33 = vld [vmem:[#allocation6 + $0x38] sm:$0xff] }
  0x4f   : > { %387 = vmatpush.msra.mxu0 %v370_v5  ;;  %891 = vmatpush.msra.mxu2 %v370_v5  ;;  %v559_v29 = vld [vmem:[#allocation8 + $0x70] sm:$0xff]  ;;  %v557_v31 = vld [vmem:[#allocation8 + $0x60] sm:$0xff]  ;;  %v554_v35 = vld [vmem:[#allocation8 + $0x48] sm:$0xff]  ;;  %p1148_p0 = pnand %p1147_p13, %p1143_p7 }
  0x50   : > { %v555_v34 = vld [vmem:[#allocation8 + $0x50] sm:$0xff]  ;;  %v553_v36 = vld [vmem:[#allocation8 + $0x40] sm:$0xff]  ;;  %v552_v37 = vld [vmem:[#allocation8 + $0x38] sm:$0xff] }
  0x51   : > { %388 = vmatpush.msra.mxu0 %v368_v6  ;;  %892 = vmatpush.msra.mxu2 %v368_v6  ;;  %v1479_v38 = vld [vmem:[#allocation6 + $0x40] sm:$0xff]  ;;  %v551_v39 = vld [vmem:[#allocation8 + $0x30] sm:$0xff]  ;;  %v550_v40 = vld [vmem:[#allocation8 + $0x28] sm:$0xff] }
  0x52   : > { %v549_v41 = vld [vmem:[#allocation8 + $0x20] sm:$0xff]  ;;  %v548_v42 = vld [vmem:[#allocation8 + $0x18] sm:$0xff]  ;;  %v1482_v43 = vld [vmem:[#allocation6 + $0x48] sm:$0xff] }
  0x53   : > { %389 = vmatpush.msra.mxu0 %v366_v7  ;;  %893 = vmatpush.msra.mxu2 %v366_v7  ;;  %v547_v44 = vld [vmem:[#allocation8 + $0x10] sm:$0xff]  ;;  %v546_v45 = vld [vmem:[#allocation8 + $0x8] sm:$0xff]  ;;  %v545_v46 = vld [vmem:[#allocation8] sm:$0xff] }
  0x54   : > { %v544_v47 = vld [vmem:[%s282_s24] sm:$0xff]  ;;  %v379_v57 = vld [vmem:[#allocation9 + $0xe8] sm:$0xff] }
  0x55   : > { %390 = vmatpush.msra.mxu0 %v364_v8  ;;  %894 = vmatpush.msra.mxu2 %v364_v8  ;;  %v1487_v48 = vld [vmem:[#allocation6 + $0x50] sm:$0xff]  ;;  %v381_v56 = vld [vmem:[#allocation9 + $0xf8] sm:$0xff]  ;;  %v375_v61 = vld [vmem:[#allocation9 + $0xc8] sm:$0xff] }
  0x56   : > { %447 = vmatpush.msra.mxu1 %v381_v56  ;;  %v377_v60 = vld [vmem:[#allocation9 + $0xd8] sm:$0xff]  ;;  %v371_v63 = vld [vmem:[#allocation9 + $0xa8] sm:$0xff] }
  0x57   : > { %391 = vmatpush.msra.mxu0 %v362_v9  ;;  %895 = vmatpush.msra.mxu2 %v362_v9  ;;  %v373_v62 = vld [vmem:[#allocation9 + $0xb8] sm:$0xff]  ;;  %v367_v3 = vld [vmem:[#allocation9 + $0x88] sm:$0xff] }
  0x58   : > { %448 = vmatpush.msra.mxu1 %v379_v57  ;;  %v369_v2 = vld [vmem:[#allocation9 + $0x98] sm:$0xff]  ;;  %v363_v5 = vld [vmem:[#allocation9 + $0x68] sm:$0xff] }
  0x59   : > { %392 = vmatpush.msra.mxu0 %v360_v10  ;;  %896 = vmatpush.msra.mxu2 %v360_v10  ;;  %v365_v4 = vld [vmem:[#allocation9 + $0x78] sm:$0xff]  ;;  %v359_v8 = vld [vmem:[#allocation9 + $0x48] sm:$0xff] }
  0x5a   : > { %449 = vmatpush.msra.mxu1 %v377_v60  ;;  %v361_v7 = vld [vmem:[#allocation9 + $0x58] sm:$0xff]  ;;  %v355_v10 = vld [vmem:[#allocation9 + $0x28] sm:$0xff] }
  0x5b   : > { %393 = vmatpush.msra.mxu0 %v358_v11  ;;  %897 = vmatpush.msra.mxu2 %v358_v11  ;;  %v357_v9 = vld [vmem:[#allocation9 + $0x38] sm:$0xff] }
  0x5c   : > { %450 = vmatpush.msra.mxu1 %v375_v61  ;;  %v353_v11 = vld [vmem:[#allocation9 + $0x18] sm:$0xff] }
  0x5d   : > { %394 = vmatpush.msra.mxu0 %v356_v12  ;;  %898 = vmatpush.msra.mxu2 %v356_v12 }
  0x5e   : > { %451 = vmatpush.msra.mxu1 %v373_v62 }
  0x5f   : > { %395 = vmatpush.msra.mxu0 %v354_v13  ;;  %899 = vmatpush.msra.mxu2 %v354_v13  ;;  %v351_v13 = vld [vmem:[#allocation9 + $0x8] sm:$0xff] }
  0x60   : > { %452 = vmatpush.msra.mxu1 %v371_v63 }
  0x61   : > { %396 = vmatpush.msra.mxu0 %v352_v14  ;;  %900 = vmatpush.msra.mxu2 %v352_v14 }
  0x62   : > { %453 = vmatpush.msra.mxu1 %v369_v2 }
  0x63   : > { %397 = vmatpush.msra.mxu0 %v350_v15  ;;  %901 = vmatpush.msra.mxu2 %v350_v15 }
  0x64   : > { %398 = vmatmul.f32.vlgmr.msra.gmra.mxu0 %v1440_v16  ;;  %431 = vmatmul.f32.vlgmr.msra.gmra.mxu2 %v1442_v17 }
  0x65   : > { %561 = vmatpush.msrb.mxu2 %v560_v27  ;;  %454 = vmatpush.msra.mxu1 %v367_v3 }
  0x67   : > { %562 = vmatpush.msrb.mxu2 %v559_v29  ;;  %455 = vmatpush.msra.mxu1 %v365_v4 }
  0x69   : > { %563 = vmatpush.msrb.mxu2 %v558_v30  ;;  %456 = vmatpush.msra.mxu1 %v363_v5 }
  0x6b   : > { %564 = vmatpush.msrb.mxu2 %v557_v31  ;;  %457 = vmatpush.msra.mxu1 %v361_v7  ;;  %v633_v31 = vlaneseq }
  0x6c   : > { %401 = vmatmul.f32.gmra.mxu0 %v1446_v18  ;;  %434 = vmatmul.f32.gmra.mxu2 %v1448_v19 }
  0x6d   : > { %565 = vmatpush.msrb.mxu2 %v556_v32  ;;  %458 = vmatpush.msra.mxu1 %v359_v8  ;;  %v634_v32 = vand.u32 127, %v633_v31 }
  0x6f   : > { %566 = vmatpush.msrb.mxu2 %v555_v34  ;;  %459 = vmatpush.msra.mxu1 %v357_v9  ;;  %vm635_vm0 = vcmp.lt.s32.totalorder %v634_v32, 8 }
  0x71   : > { %567 = vmatpush.msrb.mxu2 %v554_v35  ;;  %460 = vmatpush.msra.mxu1 %v355_v10 }
  0x73   : > { %568 = vmatpush.msrb.mxu2 %v553_v36  ;;  %461 = vmatpush.msra.mxu1 %v353_v11 }
  0x74   : > { %404 = vmatmul.f32.gmra.mxu0 %v1452_v20  ;;  %437 = vmatmul.f32.gmra.mxu2 %v1454_v21 }
  0x75   : > { %569 = vmatpush.msrb.mxu2 %v552_v37  ;;  %462 = vmatpush.msra.mxu1 %v351_v13 }
  0x76   : > { %463 = vmatmul.f32.vlgmr.msra.gmra.mxu1 %v1440_v16 }
  0x77   : > { %570 = vmatpush.msrb.mxu2 %v551_v39 }
  0x79   : > { %571 = vmatpush.msrb.mxu2 %v550_v40 }
  0x7b   : > { %572 = vmatpush.msrb.mxu2 %v549_v41 }
  0x7c   : > { %407 = vmatmul.f32.gmra.mxu0 %v1458_v22  ;;  %440 = vmatmul.f32.gmra.mxu2 %v1460_v23 }
  0x7d   : > { %573 = vmatpush.msrb.mxu2 %v548_v42 }
  0x7e   : > { %466 = vmatmul.f32.gmra.mxu1 %v1446_v18 }
  0x7f   : > { %574 = vmatpush.msrb.mxu2 %v547_v44 }
  0x81   : > { %575 = vmatpush.msrb.mxu2 %v546_v45 }
  0x83   : > { %576 = vmatpush.msrb.mxu2 %v545_v46 }
  0x84   : > { %410 = vmatmul.f32.gmra.mxu0 %v1464_v24  ;;  %443 = vmatmul.f32.gmra.mxu2 %v1466_v25 }
  0x86   : > { %469 = vmatmul.f32.gmra.mxu1 %v1452_v20 }
  0x8c   : > { %413 = vmatmul.f32.gmra.mxu0 %v1470_v26  ;;  %577 = vmatmul.f32.vlgmr.msrb.gmra.mxu2 %v544_v47 }
  0x8e   : > { %472 = vmatmul.f32.gmra.mxu1 %v1458_v22 }
  0x94   : > { %416 = vmatmul.f32.gmra.mxu0 %v1473_v28 }
  0x96   : > { %475 = vmatmul.f32.gmra.mxu1 %v1464_v24 }
  0x9c   : > { %419 = vmatmul.f32.gmra.mxu0 %v1476_v33 }
  0x9e   : > { %478 = vmatmul.f32.gmra.mxu1 %v1470_v26 }
  0xa4   : > { %422 = vmatmul.f32.gmra.mxu0 %v1479_v38 }
  0xa6   : > { %481 = vmatmul.f32.gmra.mxu1 %v1473_v28 }
  0xac   : > { %425 = vmatmul.f32.gmra.mxu0 %v1482_v43 }
  0xae   : > { %484 = vmatmul.f32.gmra.mxu1 %v1476_v33 }
  0xb4   : > { %428 = vmatmul.f32.gmra.mxu0 %v1487_v48 }
  0xb6   : > { %487 = vmatmul.f32.gmra.mxu1 %v1479_v38 }
  0xbe   : > { %490 = vmatmul.f32.gmra.mxu1 %v1482_v43 }
  0xc6   : > { %493 = vmatmul.f32.gmra.mxu1 %v1487_v48 }
  0xce   : > { %496 = vmatmul.f32.gmra.mxu1 %v1442_v17 }
  0xd6   : > { %499 = vmatmul.f32.gmra.mxu1 %v1448_v19 }
  0xde   : > { %502 = vmatmul.f32.gmra.mxu1 %v1454_v21 }
  0xe1   : > { %v1490_v49 = vpop.f32.mrf.mxu0 }
  0xe6   : > { %505 = vmatmul.f32.gmra.mxu1 %v1460_v23 }
  0xe7   : > { %v432_v50 = vpop.f32.mrf.mxu2 }
  0xe9   : > { %v1492_v51 = vpop.f32.mrf.mxu0 }
  0xee   : > { %508 = vmatmul.f32.gmra.mxu1 %v1466_v25 }
  0xef   : > { %v435_v52 = vpop.f32.mrf.mxu2 }
  0xf1   : > { %v1494_v53 = vpop.f32.mrf.mxu0 }
  0xf3   : > { %v464_v18 = vpop.f32.mrf.mxu1 }
  0xf7   : > { %v438_v54 = vpop.f32.mrf.mxu2 }
  0xf9   : > { %v408_v55 = vpop.f32.mrf.mxu0 }
  0xfb   : > { %v467_v20 = vpop.f32.mrf.mxu1 }
  0xff   : > { %v441_v58 = vpop.f32.mrf.mxu2 }
 0x101   : > { %v411_v59 = vpop.f32.mrf.mxu0 }
 0x103   : > { %v470_v22 = vpop.f32.mrf.mxu1 }
 0x107   : > { %v444_v0 = vpop.f32.mrf.mxu2 }
 0x108   : > { %613 = vmatpush.xpose.msra.mxu3 %v444_v0 }
 0x109   : > { %v414_v1 = vpop.f32.mrf.mxu0 }
 0x10b   : > { %v473_v24 = vpop.f32.mrf.mxu1 }
 0x10c   : > { %614 = vmatpush.xpose.msra.mxu3 %v441_v58 }
 0x10f   : > { %v578_v16 = vpop.f32.mrf.mxu2 }
 0x110   : > { %615 = vmatpush.xpose.msra.mxu3 %v438_v54 }
 0x111   : > { %v417_v6 = vpop.f32.mrf.mxu0 }
 0x113   : > { %v476_v26 = vpop.f32.mrf.mxu1 }
 0x114   : > { %616 = vmatpush.xpose.msra.mxu3 %v435_v52 }
 0x118   : > { %617 = vmatpush.xpose.msra.mxu3 %v432_v50 }
 0x119   : > { %v420_v12 = vpop.f32.mrf.mxu0 }
 0x11b   : > { %v479_v28 = vpop.f32.mrf.mxu1 }
 0x121   : > { %v423_v14 = vpop.f32.mrf.mxu0 }
 0x123   : > { %v482_v29 = vpop.f32.mrf.mxu1 }
 0x129   : > { %v426_v15 = vpop.f32.mrf.mxu0 }
 0x12b   : > { %v485_v30 = vpop.f32.mrf.mxu1 }
 0x131   : > { %v429_v27 = vpop.f32.mrf.mxu0 }
 0x132   : > { %618 = vmatpush.xpose.msra.mxu3 %v429_v27 }
 0x133   : > { %v488_v33 = vpop.f32.mrf.mxu1 }
 0x136   : > { %619 = vmatpush.xpose.msra.mxu3 %v426_v15 }
 0x13a   : > { %620 = vmatpush.xpose.msra.mxu3 %v423_v14 }
 0x13b   : > { %v491_v21 = vpop.f32.mrf.mxu1 }
 0x13e   : > { %621 = vmatpush.xpose.msra.mxu3 %v420_v12 }
 0x142   : > { %622 = vmatpush.xpose.msra.mxu3 %v417_v6 }
 0x143   : > { %v494_v34 = vpop.f32.mrf.mxu1 }
 0x146   : > { %623 = vmatpush.xpose.msra.mxu3 %v414_v1 }
 0x14a   : > { %624 = vmatpush.xpose.msra.mxu3 %v411_v59 }
 0x14b   : > { %v497_v23 = vpop.f32.mrf.mxu1 }
 0x14e   : > { %625 = vmatpush.xpose.msra.mxu3 %v408_v55 }
 0x152   : > { %626 = vmatpush.xpose.msra.mxu3 %v1494_v53 }
 0x153   : > { %v500_v35 = vpop.f32.mrf.mxu1 }
 0x156   : > { %627 = vmatpush.xpose.msra.mxu3 %v1492_v51 }
 0x15a   : > { %628 = vmatpush.xpose.msra.mxu3 %v1490_v49 }
 0x15b   : > { %v503_v25 = vpop.f32.mrf.mxu1 }
 0x15d   : > { %629 = vmatmul.f32.vlgmr.msra.gmra.mxu3 %v578_v16 }
 0x163   : > { %v506_v36 = vpop.f32.mrf.mxu1 }
 0x16b   : > { %v509_v37 = vpop.f32.mrf.mxu1 }
 0x16c   : > { %659 = vmatpush.msra.mxu2 %v509_v37 }
 0x16e   : > { %660 = vmatpush.msra.mxu2 %v506_v36 }
 0x170   : > { %661 = vmatpush.msra.mxu2 %v503_v25 }
 0x172   : > { %662 = vmatpush.msra.mxu2 %v500_v35 }
 0x174   : > { %663 = vmatpush.msra.mxu2 %v497_v23 }
 0x176   : > { %664 = vmatpush.msra.mxu2 %v494_v34 }
 0x178   : > { %665 = vmatpush.msra.mxu2 %v491_v21 }
 0x17a   : > { %666 = vmatpush.msra.mxu2 %v488_v33 }
 0x17c   : > { %667 = vmatpush.msra.mxu2 %v485_v30 }
 0x17e   : > { %668 = vmatpush.msra.mxu2 %v482_v29 }
 0x180   : > { %669 = vmatpush.msra.mxu2 %v479_v28 }
 0x182   : > { %670 = vmatpush.msra.mxu2 %v476_v26 }
 0x184   : > { %671 = vmatpush.msra.mxu2 %v473_v24 }
 0x186   : > { %672 = vmatpush.msra.mxu2 %v470_v22 }
 0x188   : > { %673 = vmatpush.msra.mxu2 %v467_v20 }
 0x18a   : > { %674 = vmatpush.msra.mxu2 %v464_v18 }
 0x1e0   : > { %v630_v17 = vpop.f32.mrf.mxu3 }
 0x1e1   : > { %v636_v19 = vsel %vm635_vm0, %v630_v17, -1e+30 }
 0x1e2   : > { %637 = vmax.xlane.f32.xlu0 %v636_v19 }
 0x255   : > { %v638_v38 = vpop.xlane.xlu0 %637 }
 0x256   : > { %v639_v39 = vsub.f32 %v636_v19, %v638_v38 }
 0x258   : > { %v640_v40 = vmul.f32 1.442695, %v639_v39 }
 0x25a   : > { %1000 = vpow2.f32 %v640_v40 }
 0x260   : > { %v1001_v41 = vpop.eup %1000 }
 0x261   : > { %642 = vadd.xlane.f32.xlu0 %v1001_v41 }
 0x2d4   : > { %v643_v42 = vpop.xlane.xlu0 %642 }
 0x2d5   : > { %1002 = vrcp.f32 %v643_v42  ;;  %v655_v46 = vand.u32 2147483648, %v643_v42  ;;  %v653_v48 = vand.u32 2147483647, %v643_v42  ;;  %vm649_vm2 = vweird.f32 %v643_v42 }
 0x2d7   : > { %v656_v50 = vor.u32 1.1754944e-38, %v655_v46  ;;  %vm654_vm4 = vcmp.eq.f32.partialorder %v653_v48, 8.507059e+37 }
 0x2db   : > { %v1003_v43 = vpop.eup %1002 }
 0x2dc   : > { %v645_v44 = vmul.f32 %v1003_v43, %v643_v42  ;;  %vm650_vm1 = vweird.f32 %v1003_v43 }
 0x2dd   : > { %vm651_vm3 = vmor %vm649_vm2, %vm650_vm1 }
 0x2de   : > { %v646_v45 = vsub.f32 1.0, %v645_v44 }
 0x2e0   : > { %v647_v47 = vmul.f32 %v1003_v43, %v646_v45 }
 0x2e2   : > { %v648_v49 = vadd.f32 %v1003_v43, %v647_v47 }
 0x2e4   : > { %v652_v51 = vsel %vm651_vm3, %v1003_v43, %v648_v49 }
 0x2e5   : > { %v657_v52 = vsel %vm654_vm4, %v656_v50, %v652_v51 }
 0x2e6   : > { %v658_v53 = vmul.f32 %v1001_v41, %v657_v52 }
 0x2e8   : > { %675 = vmatmul.f32.vlgmr.msra.gmra.mxu2 %v658_v53  ;;  %679 = vst [vmem:[%s322_s1] sm:$0xff] %v658_v53 }
 0x2e9   : > { %1151 = shalt.err (!%p1148_p0)
}
 0x2ea   : > { %914 = dma.vmem_to_hbm [thread:$0]  (%p1397_p3), %s701_s17, 128, %s703_s29, %s682_s12  }
 0x2eb   : > { %s713_s30 = scalar_lea.hbm %s1574_s5, %s881_s26  ;;  %s329_s7 = scalar_lea.vmem [#allocation12], %s1420_s8 }
 0x2ec   : > { %s715_s6 = sshll.u32 %s329_s7, 4  ;;  %s717_s10 = sshll.u32 %s713_s30, 4  ;;  %s716_s6 = int_to_ptr.vmem [resolvable:$true] %s715_s6  ;;  %s718_s10 = int_to_ptr.hbm [resolvable:$true] %s717_s10 }
 0x2ed   : > { %s687_s9 = scalar_lea.sflag [#allocation13], %s1417_s14  ;;  %s1166_s11 = sshra.s32 %s718_s10, 4  ;;  %s1167_s11 = int_to_ptr.hbm [resolvable:$true] %s1166_s11 }
 0x2ee   : > { %s1168_s21 = scalar_lea.hbm %s1167_s11, 8  ;;  %s1172_s12 = scalar_lea.hbm %s1574_s5, 16 }
 0x2ef   : > { %p1169_p2 = scmp.ne.s32.totalorder %s1167_s11, %s1168_s21  ;;  %p1173_p8 = scmp.lt.s32.totalorder %s1167_s11, %s1574_s5 }
 0x2f0   : > { %p1174_p1 = scmp.lt.s32.totalorder %s1172_s12, %s1168_s21 }
 0x2f1   : > { %p1170_p10 = pnand %p1169_p2, %p1397_p3 }
 0x2f2   : > { %p1175_p4 = por %p1174_p1, %p1173_p8 }
 0x2f3   : > { %p1171_p5 = pneg %p1170_p10 }
 0x2f5   : > { %p1176_p7 = pnand %p1175_p4, %p1171_p5 }
 0x36b   : > { %v676_v54 = vpop.f32.mrf.mxu2 }
 0x36c   : > { %680 = vst [vmem:[%s329_s7] sm:$0xff] %v676_v54 }
 0x36d   : > { %1179 = shalt.err (!%p1176_p7)
}
 0x36e   : > { %915 = dma.vmem_to_hbm [thread:$0]  (%p1397_p3), %s716_s6, 128, %s718_s10, %s687_s9  }
 0x36f PF: > { %s729_s14 = sand.u32 1, %s1230_s18   ;;  %p933_p9 = pnand %p870_p11, %p1337_p6 }
 0x370   : > { %s730_s15 = scalar_lea.sflag [#allocation5], %s729_s14 }
 0x371   : > { %p934_p12 = pneg %p933_p9 }
 0x373   : > { %1221 = dma.done.wait (%p934_p12), %s730_s15, 128  }
 0x374   : > { %1223 = vsyncadd (%p934_p12), %s730_s15, 4294967168  ;;  %s740_s24 = scalar_lea.sflag [#allocation13], %s729_s14 }
 0x375   : > { %1225 = dma.done.wait (%p934_p12), %s740_s24, 128  }
 0x376   : > { %1227 = vsyncadd (%p934_p12), %s740_s24, 4294967168  ;;  %s27_s23 = sadd.s32 1, %s1250_s23   ;;  %s1585_s18 = smov %s1234_s19 }
 0x377   : > { %p24_p13 = scmp.ge.s32.totalorder %s27_s23, 4   ;;  %s1586_s19 = smov %s1238_s20 }
 0x378   : > { %s1587_s20 = smov %s1406_s25  ;;  %s1588_s21 = smov %s1246_s22 }
 0x379   : > { %s1589_s22 = smov %s1591_s16  ;;  %26 = sbr.rel (!%p24_p13) target bundleno = 12 (0xc), region = 115 }
 0x37e   :  { %746 = vsyncpa [#allocation4], 1 }
 0x37f   :  { %748 = vsyncpa [#allocation4 + $0x1], 1 }
 0x380   :  { %749 = vsyncpa [#allocation7], 1 }
 0x381   :  { %750 = vsyncpa [#allocation10], 1 }
 0x382   :  { %751 = vsyncpa [#allocation5], 1 }
 0x383   :  { %753 = vsyncpa [#allocation5 + $0x1], 1 }
 0x384   :  { %754 = vsyncpa [#allocation13], 1 }
 0x385   :  { %756 = vsyncpa [#allocation13 + $0x1], 1 }

// kernel: tpu_custom_call.1
= control target key start
LH: loop header
LB: loop body
LE: loop exit
PB: predicated region body
PF: predicated region fallthrough
CT: control target
= control target key end

     0   :  { %s1596_s0 = inlined_call_operand.hbm [shape: f32[2,8,128], index: 0, kind: input, shape index: {}]   ;;  %s1597_s1 = inlined_call_operand.hbm [shape: f32[2,128,128], index: 1, kind: input, shape index: {}]   ;;  %s1598_s2 = inlined_call_operand.hbm [shape: f32[128,128], index: 2, kind: input, shape index: {}]   ;;  %s1599_s3 = inlined_call_operand.hbm [shape: f32[128,256], index: 3, kind: input, shape index: {}]   ;;  %s1600_s4 = inlined_call_operand.hbm [shape: f32[2,8,128], index: 4, kind: output, shape index: {0}]   ;;  %s1601_s5 = inlined_call_operand.hbm [shape: f32[2,8,128], index: 5, kind: output, shape index: {1}]  }
   0x1   :  { %1607 = sst [smem:[#allocation24_spill]] %s1598_s2 }
   0x2   :  { %1608 = sst [smem:[#allocation25_spill]] %s1599_s3 }
   0x3   :  { %11 = vsyncpa [#allocation4], 0 }
   0x4   :  { %13 = vsyncpa [#allocation4 + $0x1], 0 }
   0x5   :  { %14 = vsyncpa [#allocation7], 0 }
   0x6   :  { %16 = vsyncpa [#allocation7 + $0x1], 0 }
   0x7   :  { %17 = vsyncpa [#allocation10], 0 }
   0x8   :  { %18 = vsyncpa [#allocation5], 0 }
   0x9   :  { %20 = vsyncpa [#allocation5 + $0x1], 0 }
   0xa   :  { %21 = vsyncpa [#allocation13], 0 }
   0xb   :  { %23 = vsyncpa [#allocation13 + $0x1], 0  ;;  %s1317_s18 = smov 0   ;;  %s1319_s19 = smov 0  }
   0xc   :  { %s1321_s20 = smov 0   ;;  %s1323_s21 = smov 0  }
   0xd   :  { %s1325_s22 = smov 0   ;;  %s1327_s23 = smov 0  }
   0xe LB: > { %1609 = sst [smem:[#allocation20_spill]] %s1267_s20  ;;  %s1348_s24 = sadd.s32 4294967295, %s1279_s23   ;;  %s1279_s23 = sphi %s1327_s23, %s29_s23   ;;  %s1275_s22 = sphi %s1325_s22, %s1629_s22   ;;  %s1271_s21 = sphi %s1323_s21, %s1628_s21   ;;  %s1267_s20 = sphi %s1321_s20, %s1624_s20   ;;  %s1263_s19 = sphi %s1319_s19, %s1627_s19   ;;  %s1259_s18 = sphi %s1317_s18, %s1626_s18  }
   0xf   : > { %p893_p0 = scmp.ge.s32.totalorder %s1279_s23, 1  ;;  %p64_p1 = scmp.eq.s32.totalorder %s1348_s24, 0 }
  0x10   : > { %p198_p2 = scmp.lt.s32.totalorder %s1279_s23, 3  ;;  %s1610_s2 = sld [smem:[#allocation24_spill]] }
  0x11   : > { %s1281_s29 = smov [#allocation8]   ;;  %p896_p6 = scmp.ge.s32.totalorder %s1279_s23, 2 }
  0x12   : > { %p1356_p3 = pnand %p893_p0, %p198_p2  ;;  %s211_s30 = sshll.u32 %s1281_s29, 4  ;;  %s212_s30 = int_to_ptr.vmem [resolvable:$true] %s211_s30 }
  0x13   : > { %s1612_s3 = sld [smem:[#allocation25_spill]]  ;;  %s1602_s9 = smov 128  }
  0x14   : > { %p948_p4 = pneg %p1356_p3  ;;  %s1603_s10 = smov 8  }
  0x15   : > { %s1284_s11 = smov [#allocation9]   ;;  %s1285_s13 = smov 256  }
  0x16   : > { %s209_s27 = sshll.u32 %s1610_s2, 4  ;;  %p949_p5 = pnand %p948_p4, %p64_p1  ;;  %s210_s27 = int_to_ptr.hbm [resolvable:$true] %s209_s27 }
  0x17   : > { %s225_s12 = sshll.u32 %s1284_s11, 4  ;;  %s1286_s14 = smov 16   ;;  %s226_s12 = int_to_ptr.vmem [resolvable:$true] %s225_s12 }
  0x18   : > { %951 = dma.hbm_to_vmem [thread:$0]  (!%p949_p5), %s210_s27, 2048, %s212_s30, [#allocation7], %s1602_s9, %s1602_s9, %s1603_s10  }
  0x19   : > { %s223_s8 = sshll.u32 %s1612_s3, 4  ;;  %s892_s15 = sadd.s32 4294967294, %s1279_s23   ;;  %s224_s8 = int_to_ptr.hbm [resolvable:$true] %s223_s8 }
  0x1a   : > { %954 = dma.hbm_to_vmem [thread:$0]  (!%p949_p5), %s224_s8, 4096, %s226_s12, [#allocation10], %s1285_s13, %s1285_s13, %s1286_s14  }
  0x1b   : > { %s41_s16 = sadd.s32 1, %s1275_s22  ;;  %s50_s17 = sadd.s32 1, %s1267_s20 }
  0x1c   : > { %p43_p7 = scmp.ge.s32.totalorder %s41_s16, 2  ;;  %p57_p8 = scmp.ne.s32.totalorder %s1267_s20, %s1263_s19 }
  0x1d   : > { %p58_p9 = scmp.eq.s32.totalorder %s1279_s23, 0  ;;  %p63_p11 = scmp.ne.s32.totalorder %s1263_s19, %s1259_s18 }
  0x1e   : > { %s1631_s16 = smov (%p43_p7, %s41_s16), 0  ;;  %p157_p12 = scmp.eq.s32.totalorder %s1348_s24, 1 }
  0x1f   : > { %1613 = sst [smem:[#allocation21_spill]] %s1631_s16  ;;  %p1379_p10 = por %p58_p9, %p57_p8 }
  0x20   : > { %s45_s26 = ssub.s32 %s1275_s22, %s1631_s16  ;;  %p1390_p0 = por %p64_p1, %p63_p11 }
  0x21   : > { %p48_p13 = scmp.eq.s32.totalorder %s45_s26, 0  ;;  %p1394_p2 = por %p157_p12, %p57_p8 }
  0x22   : > { %p163_p4 = scmp.eq.s32.totalorder %s892_s15, 1  ;;  %p971_p7 = scmp.lt.s32.totalorder %s1279_s23, 2 }
  0x23   : > { %s1399_s30 = scalar_select %p48_p13, %s1267_s20, %s50_s17  }
  0x24   : > { %p1401_p5 = por %p163_p4, %p63_p11  ;;  %s239_s7 = sand.u32 1, %s1267_s20  }
  0x25   : > { %1617 = sst [smem:[#allocation22_spill]] %s1399_s30  ;;  %s898_s8 = sshll.u32 %s1275_s22, 3 }
  0x26   : > { %s1618_s6 = scalar_select %p1401_p5, 1, 0 }
  0x27   : > { %s897_s11 = sshll.u32 %s239_s7, 3  ;;  %s248_s14 = scalar_lea.hbm %s1596_s0, %s898_s8 }
  0x28   : > { %1619 = sst [smem:[#allocation23_spill]] %s1618_s6  ;;  %s250_s26 = sshll.u32 %s248_s14, 4  ;;  %s251_s26 = int_to_ptr.hbm [resolvable:$true] %s250_s26 }
  0x29   : > { %s243_s9 = scalar_lea.vmem [#allocation3], %s897_s11  ;;  %p956_p8 = pnand %p971_p7, %p1379_p10 }
  0x2a   : > { %s252_s10 = sshll.u32 %s243_s9, 4  ;;  %s899_s15 = sshll.u32 %s239_s7, 7  ;;  %s253_s10 = int_to_ptr.vmem [resolvable:$true] %s252_s10 }
  0x2b   : > { %s915_s17 = sshll.u32 %s1275_s22, 7  ;;  %s263_s2 = scalar_lea.vmem [#allocation6], %s899_s15 }
  0x2c   : > { %s271_s3 = sshll.u32 %s263_s2, 4  ;;  %s240_s16 = scalar_lea.sflag [#allocation4], %s239_s7  ;;  %s272_s3 = int_to_ptr.vmem [resolvable:$true] %s271_s3 }
  0x2d   : > { %958 = dma.hbm_to_vmem [thread:$0]  (!%p956_p8), %s251_s26, 128, %s253_s10, %s240_s16  }
  0x2e   : > { %s259_s30 = sand.u32 1, %s1279_s23   ;;  %s268_s12 = scalar_lea.hbm %s1597_s1, %s915_s17 }
  0x2f   : > { %s269_s8 = sshll.u32 %s268_s12, 4  ;;  %s260_s11 = scalar_lea.sflag [#allocation7], %s259_s30  ;;  %s270_s8 = int_to_ptr.hbm [resolvable:$true] %s269_s8 }
  0x30   : > { %s1620_s9 = smov 8   ;;  %s1621_s13 = smov 128  }
  0x31   : > { %961 = dma.hbm_to_vmem [thread:$0]  (!%p956_p8), %s270_s8, 2048, %s272_s3, %s260_s11, %s1621_s13, %s1621_s13, %s1620_s9  }
  0x32   : > { %283 = sbr.rel (%p1356_p3) target bundleno = 874 (0x36a), region = 36  ;;  %s1424_s2 = sand.u32 (!%p1356_p3), 1, %s1263_s19  }
  0x33   : > { %s1427_s10 = sshll.u32 (!%p1356_p3), %s1424_s2, 3  ;;  %s286_s20 = scalar_lea.sflag (!%p1356_p3), [#allocation4], %s1424_s2 }
  0x34   : > { %s289_s16 = scalar_lea.vmem (!%p1356_p3), [#allocation3], %s1427_s10 }
  0x37   : > { %1234 = dma.done.wait (%p1390_p0), %s286_s20, 128  }
  0x38   : > { %1236 = vsyncadd (%p1390_p0), %s286_s20, 4294967168  ;;  %s295_s3 = sand.u32 1, %s1348_s24   ;;  %s904_s28 = sshll.u32 %s1424_s2, 7 }
  0x39   : > { %s296_s25 = scalar_lea.sflag [#allocation7], %s295_s3  ;;  %s1437_s30 = scalar_lea.vmem [#allocation6], %s904_s28 }
  0x3a   : > { %1238 = dma.done.wait (%p1390_p0), %s296_s25, 2048  }
  0x3b   : > { %1240 = vsyncadd (%p1390_p0), %s296_s25, 4294965248 }
  0x3c   : > { %1242 = dma.done.wait (%p64_p1), [#allocation7], 2048  }
  0x3d   : > { %1244 = vsyncadd (%p64_p1), [#allocation7], 4294965248 }
  0x3e   : > { %1246 = dma.done.wait (%p64_p1), [#allocation10], 4096  }
  0x3f   : > { %1248 = vsyncadd (%p64_p1), [#allocation10], 4294963200  ;;  %v397_v0 = vld [vmem:[#allocation9 + $0xf0] sm:$0xff]  ;;  %v395_v1 = vld [vmem:[#allocation9 + $0xe0] sm:$0xff]  ;;  %s339_s24 = scalar_lea.vmem [#allocation11], %s1427_s10  ;;  %s911_s27 = sshll.u32 %s1271_s21, 3 }
  0x40   : > { %399 = vmatpush.msra.mxu0 %v397_v0  ;;  %916 = vmatpush.msra.mxu2 %v397_v0  ;;  %v393_v2 = vld [vmem:[#allocation9 + $0xd0] sm:$0xff]  ;;  %v391_v3 = vld [vmem:[#allocation9 + $0xc0] sm:$0xff]  ;;  %v1455_v17 = vld [vmem:[%s1437_s30 + $0x58] sm:$0xff]  ;;  %s715_s14 = scalar_lea.hbm %s1600_s4, %s911_s27  ;;  %s717_s26 = sshll.u32 %s339_s24, 4  ;;  %s718_s26 = int_to_ptr.vmem [resolvable:$true] %s717_s26 }
  0x41   : > { %v389_v4 = vld [vmem:[#allocation9 + $0xb0] sm:$0xff]  ;;  %v387_v5 = vld [vmem:[#allocation9 + $0xa0] sm:$0xff]  ;;  %v1460_v18 = vld [vmem:[%s1437_s30 + $0x8] sm:$0xff]  ;;  %s719_s15 = sshll.u32 %s715_s14, 4  ;;  %s699_s17 = scalar_lea.sflag [#allocation5], %s1424_s2  ;;  %s720_s15 = int_to_ptr.hbm [resolvable:$true] %s719_s15 }
  0x42   : > { %400 = vmatpush.msra.mxu0 %v395_v1  ;;  %917 = vmatpush.msra.mxu2 %v395_v1  ;;  %v385_v6 = vld [vmem:[#allocation9 + $0x90] sm:$0xff]  ;;  %v383_v7 = vld [vmem:[#allocation9 + $0x80] sm:$0xff]  ;;  %v1471_v21 = vld [vmem:[%s1437_s30 + $0x68] sm:$0xff]  ;;  %s1167_s12 = sshra.s32 %s720_s15, 4  ;;  %s1173_s21 = scalar_lea.hbm %s1600_s4, 16  ;;  %s1168_s12 = int_to_ptr.hbm [resolvable:$true] %s1167_s12 }
  0x43   : > { %v381_v8 = vld [vmem:[#allocation9 + $0x70] sm:$0xff]  ;;  %v379_v9 = vld [vmem:[#allocation9 + $0x60] sm:$0xff]  ;;  %v1476_v22 = vld [vmem:[%s1437_s30 + $0x18] sm:$0xff]  ;;  %s1169_s8 = scalar_lea.hbm %s1168_s12, 8  ;;  %p1174_p10 = scmp.lt.s32.totalorder %s1168_s12, %s1600_s4 }
  0x44   : > { %401 = vmatpush.msra.mxu0 %v393_v2  ;;  %918 = vmatpush.msra.mxu2 %v393_v2  ;;  %v377_v10 = vld [vmem:[#allocation9 + $0x50] sm:$0xff]  ;;  %v375_v11 = vld [vmem:[#allocation9 + $0x40] sm:$0xff]  ;;  %v1487_v25 = vld [vmem:[%s1437_s30 + $0x78] sm:$0xff]  ;;  %p1170_p1 = scmp.ne.s32.totalorder %s1168_s12, %s1169_s8  ;;  %p1175_p11 = scmp.lt.s32.totalorder %s1173_s21, %s1169_s8 }
  0x45   : > { %v373_v12 = vld [vmem:[#allocation9 + $0x30] sm:$0xff]  ;;  %v371_v13 = vld [vmem:[#allocation9 + $0x20] sm:$0xff]  ;;  %v1492_v26 = vld [vmem:[%s1437_s30 + $0x28] sm:$0xff] }
  0x46   : > { %402 = vmatpush.msra.mxu0 %v391_v3  ;;  %919 = vmatpush.msra.mxu2 %v391_v3  ;;  %v369_v14 = vld [vmem:[#allocation9 + $0x10] sm:$0xff]  ;;  %v367_v15 = vld [vmem:[#allocation9] sm:$0xff]  ;;  %v577_v27 = vld [vmem:[#allocation8 + $0x78] sm:$0xff]  ;;  %p1171_p3 = pnand %p1170_p1, %p1394_p2  ;;  %p1176_p12 = por %p1175_p11, %p1174_p10 }
  0x47   : > { %v1452_v16 = vld [vmem:[%s1437_s30] sm:$0xff]  ;;  %v1468_v20 = vld [vmem:[%s1437_s30 + $0x10] sm:$0xff]  ;;  %v575_v30 = vld [vmem:[#allocation8 + $0x68] sm:$0xff] }
  0x48   : > { %403 = vmatpush.msra.mxu0 %v389_v4  ;;  %920 = vmatpush.msra.mxu2 %v389_v4  ;;  %v1463_v19 = vld [vmem:[%s1437_s30 + $0x60] sm:$0xff]  ;;  %v1479_v23 = vld [vmem:[%s1437_s30 + $0x70] sm:$0xff]  ;;  %v573_v32 = vld [vmem:[#allocation8 + $0x58] sm:$0xff]  ;;  %p1172_p9 = pneg %p1171_p3 }
  0x49   : > { %v1484_v24 = vld [vmem:[%s1437_s30 + $0x20] sm:$0xff]  ;;  %v1496_v28 = vld [vmem:[%s1437_s30 + $0x30] sm:$0xff]  ;;  %v1500_v33 = vld [vmem:[%s1437_s30 + $0x38] sm:$0xff] }
  0x4a   : > { %404 = vmatpush.msra.mxu0 %v387_v5  ;;  %921 = vmatpush.msra.mxu2 %v387_v5  ;;  %v576_v29 = vld [vmem:[#allocation8 + $0x70] sm:$0xff]  ;;  %v574_v31 = vld [vmem:[#allocation8 + $0x60] sm:$0xff]  ;;  %v571_v35 = vld [vmem:[#allocation8 + $0x48] sm:$0xff]  ;;  %p1177_p13 = pnand %p1176_p12, %p1172_p9 }
  0x4b   : > { %v572_v34 = vld [vmem:[#allocation8 + $0x50] sm:$0xff]  ;;  %v570_v36 = vld [vmem:[#allocation8 + $0x40] sm:$0xff]  ;;  %v569_v37 = vld [vmem:[#allocation8 + $0x38] sm:$0xff] }
  0x4c   : > { %405 = vmatpush.msra.mxu0 %v385_v6  ;;  %922 = vmatpush.msra.mxu2 %v385_v6  ;;  %v1504_v38 = vld [vmem:[%s1437_s30 + $0x40] sm:$0xff]  ;;  %v568_v39 = vld [vmem:[#allocation8 + $0x30] sm:$0xff]  ;;  %v567_v40 = vld [vmem:[#allocation8 + $0x28] sm:$0xff] }
  0x4d   : > { %v566_v41 = vld [vmem:[#allocation8 + $0x20] sm:$0xff]  ;;  %v565_v42 = vld [vmem:[#allocation8 + $0x18] sm:$0xff]  ;;  %v1508_v43 = vld [vmem:[%s1437_s30 + $0x48] sm:$0xff] }
  0x4e   : > { %406 = vmatpush.msra.mxu0 %v383_v7  ;;  %923 = vmatpush.msra.mxu2 %v383_v7  ;;  %v564_v44 = vld [vmem:[#allocation8 + $0x10] sm:$0xff]  ;;  %v563_v45 = vld [vmem:[#allocation8 + $0x8] sm:$0xff]  ;;  %v562_v46 = vld [vmem:[#allocation8] sm:$0xff] }
  0x4f   : > { %v561_v47 = vld [vmem:[%s289_s16] sm:$0xff]  ;;  %v396_v57 = vld [vmem:[#allocation9 + $0xe8] sm:$0xff] }
  0x50   : > { %407 = vmatpush.msra.mxu0 %v381_v8  ;;  %924 = vmatpush.msra.mxu2 %v381_v8  ;;  %v1514_v48 = vld [vmem:[%s1437_s30 + $0x50] sm:$0xff]  ;;  %v398_v56 = vld [vmem:[#allocation9 + $0xf8] sm:$0xff]  ;;  %v392_v61 = vld [vmem:[#allocation9 + $0xc8] sm:$0xff] }
  0x51   : > { %464 = vmatpush.msra.mxu1 %v398_v56  ;;  %v394_v60 = vld [vmem:[#allocation9 + $0xd8] sm:$0xff]  ;;  %v388_v63 = vld [vmem:[#allocation9 + $0xa8] sm:$0xff] }
  0x52   : > { %408 = vmatpush.msra.mxu0 %v379_v9  ;;  %925 = vmatpush.msra.mxu2 %v379_v9  ;;  %v390_v62 = vld [vmem:[#allocation9 + $0xb8] sm:$0xff]  ;;  %v384_v3 = vld [vmem:[#allocation9 + $0x88] sm:$0xff] }
  0x53   : > { %465 = vmatpush.msra.mxu1 %v396_v57  ;;  %v386_v2 = vld [vmem:[#allocation9 + $0x98] sm:$0xff]  ;;  %v380_v5 = vld [vmem:[#allocation9 + $0x68] sm:$0xff] }
  0x54   : > { %409 = vmatpush.msra.mxu0 %v377_v10  ;;  %926 = vmatpush.msra.mxu2 %v377_v10  ;;  %v382_v4 = vld [vmem:[#allocation9 + $0x78] sm:$0xff]  ;;  %v376_v8 = vld [vmem:[#allocation9 + $0x48] sm:$0xff] }
  0x55   : > { %466 = vmatpush.msra.mxu1 %v394_v60  ;;  %v378_v7 = vld [vmem:[#allocation9 + $0x58] sm:$0xff]  ;;  %v372_v10 = vld [vmem:[#allocation9 + $0x28] sm:$0xff] }
  0x56   : > { %410 = vmatpush.msra.mxu0 %v375_v11  ;;  %927 = vmatpush.msra.mxu2 %v375_v11  ;;  %v374_v9 = vld [vmem:[#allocation9 + $0x38] sm:$0xff] }
  0x57   : > { %467 = vmatpush.msra.mxu1 %v392_v61  ;;  %v370_v11 = vld [vmem:[#allocation9 + $0x18] sm:$0xff] }
  0x58   : > { %411 = vmatpush.msra.mxu0 %v373_v12  ;;  %928 = vmatpush.msra.mxu2 %v373_v12 }
  0x59   : > { %468 = vmatpush.msra.mxu1 %v390_v62 }
  0x5a   : > { %412 = vmatpush.msra.mxu0 %v371_v13  ;;  %929 = vmatpush.msra.mxu2 %v371_v13  ;;  %v368_v13 = vld [vmem:[#allocation9 + $0x8] sm:$0xff] }
  0x5b   : > { %469 = vmatpush.msra.mxu1 %v388_v63 }
  0x5c   : > { %413 = vmatpush.msra.mxu0 %v369_v14  ;;  %930 = vmatpush.msra.mxu2 %v369_v14 }
  0x5d   : > { %470 = vmatpush.msra.mxu1 %v386_v2 }
  0x5e   : > { %414 = vmatpush.msra.mxu0 %v367_v15  ;;  %931 = vmatpush.msra.mxu2 %v367_v15 }
  0x5f   : > { %415 = vmatmul.f32.vlgmr.msra.gmra.mxu0 %v1452_v16  ;;  %448 = vmatmul.f32.vlgmr.msra.gmra.mxu2 %v1455_v17 }
  0x60   : > { %578 = vmatpush.msrb.mxu2 %v577_v27  ;;  %471 = vmatpush.msra.mxu1 %v384_v3 }
  0x62   : > { %579 = vmatpush.msrb.mxu2 %v576_v29  ;;  %472 = vmatpush.msra.mxu1 %v382_v4 }
  0x64   : > { %580 = vmatpush.msrb.mxu2 %v575_v30  ;;  %473 = vmatpush.msra.mxu1 %v380_v5 }
  0x66   : > { %581 = vmatpush.msrb.mxu2 %v574_v31  ;;  %474 = vmatpush.msra.mxu1 %v378_v7  ;;  %v650_v31 = vlaneseq }
  0x67   : > { %418 = vmatmul.f32.gmra.mxu0 %v1460_v18  ;;  %451 = vmatmul.f32.gmra.mxu2 %v1463_v19 }
  0x68   : > { %582 = vmatpush.msrb.mxu2 %v573_v32  ;;  %475 = vmatpush.msra.mxu1 %v376_v8  ;;  %v651_v32 = vand.u32 127, %v650_v31 }
  0x6a   : > { %583 = vmatpush.msrb.mxu2 %v572_v34  ;;  %476 = vmatpush.msra.mxu1 %v374_v9  ;;  %vm652_vm0 = vcmp.lt.s32.totalorder %v651_v32, 8 }
  0x6c   : > { %584 = vmatpush.msrb.mxu2 %v571_v35  ;;  %477 = vmatpush.msra.mxu1 %v372_v10 }
  0x6e   : > { %585 = vmatpush.msrb.mxu2 %v570_v36  ;;  %478 = vmatpush.msra.mxu1 %v370_v11 }
  0x6f   : > { %421 = vmatmul.f32.gmra.mxu0 %v1468_v20  ;;  %454 = vmatmul.f32.gmra.mxu2 %v1471_v21 }
  0x70   : > { %586 = vmatpush.msrb.mxu2 %v569_v37  ;;  %479 = vmatpush.msra.mxu1 %v368_v13 }
  0x71   : > { %480 = vmatmul.f32.vlgmr.msra.gmra.mxu1 %v1452_v16 }
  0x72   : > { %587 = vmatpush.msrb.mxu2 %v568_v39 }
  0x74   : > { %588 = vmatpush.msrb.mxu2 %v567_v40 }
  0x76   : > { %589 = vmatpush.msrb.mxu2 %v566_v41 }
  0x77   : > { %424 = vmatmul.f32.gmra.mxu0 %v1476_v22  ;;  %457 = vmatmul.f32.gmra.mxu2 %v1479_v23 }
  0x78   : > { %590 = vmatpush.msrb.mxu2 %v565_v42 }
  0x79   : > { %483 = vmatmul.f32.gmra.mxu1 %v1460_v18 }
  0x7a   : > { %591 = vmatpush.msrb.mxu2 %v564_v44 }
  0x7c   : > { %592 = vmatpush.msrb.mxu2 %v563_v45 }
  0x7e   : > { %593 = vmatpush.msrb.mxu2 %v562_v46 }
  0x7f   : > { %427 = vmatmul.f32.gmra.mxu0 %v1484_v24  ;;  %460 = vmatmul.f32.gmra.mxu2 %v1487_v25 }
  0x81   : > { %486 = vmatmul.f32.gmra.mxu1 %v1468_v20 }
  0x87   : > { %430 = vmatmul.f32.gmra.mxu0 %v1492_v26  ;;  %594 = vmatmul.f32.vlgmr.msrb.gmra.mxu2 %v561_v47 }
  0x89   : > { %489 = vmatmul.f32.gmra.mxu1 %v1476_v22 }
  0x8f   : > { %433 = vmatmul.f32.gmra.mxu0 %v1496_v28 }
  0x91   : > { %492 = vmatmul.f32.gmra.mxu1 %v1484_v24 }
  0x97   : > { %436 = vmatmul.f32.gmra.mxu0 %v1500_v33 }
  0x99   : > { %495 = vmatmul.f32.gmra.mxu1 %v1492_v26 }
  0x9f   : > { %439 = vmatmul.f32.gmra.mxu0 %v1504_v38 }
  0xa1   : > { %498 = vmatmul.f32.gmra.mxu1 %v1496_v28 }
  0xa7   : > { %442 = vmatmul.f32.gmra.mxu0 %v1508_v43 }
  0xa9   : > { %501 = vmatmul.f32.gmra.mxu1 %v1500_v33 }
  0xaf   : > { %445 = vmatmul.f32.gmra.mxu0 %v1514_v48 }
  0xb1   : > { %504 = vmatmul.f32.gmra.mxu1 %v1504_v38 }
  0xb9   : > { %507 = vmatmul.f32.gmra.mxu1 %v1508_v43 }
  0xc1   : > { %510 = vmatmul.f32.gmra.mxu1 %v1514_v48 }
  0xc9   : > { %513 = vmatmul.f32.gmra.mxu1 %v1455_v17 }
  0xd1   : > { %516 = vmatmul.f32.gmra.mxu1 %v1463_v19 }
  0xd9   : > { %519 = vmatmul.f32.gmra.mxu1 %v1471_v21 }
  0xdc   : > { %v1517_v49 = vpop.f32.mrf.mxu0 }
  0xe1   : > { %522 = vmatmul.f32.gmra.mxu1 %v1479_v23 }
  0xe2   : > { %v449_v50 = vpop.f32.mrf.mxu2 }
  0xe4   : > { %v1519_v51 = vpop.f32.mrf.mxu0 }
  0xe9   : > { %525 = vmatmul.f32.gmra.mxu1 %v1487_v25 }
  0xea   : > { %v452_v52 = vpop.f32.mrf.mxu2 }
  0xec   : > { %v1521_v53 = vpop.f32.mrf.mxu0 }
  0xee   : > { %v481_v18 = vpop.f32.mrf.mxu1 }
  0xf2   : > { %v455_v54 = vpop.f32.mrf.mxu2 }
  0xf4   : > { %v425_v55 = vpop.f32.mrf.mxu0 }
  0xf6   : > { %v484_v20 = vpop.f32.mrf.mxu1 }
  0xfa   : > { %v458_v58 = vpop.f32.mrf.mxu2 }
  0xfc   : > { %v428_v59 = vpop.f32.mrf.mxu0 }
  0xfe   : > { %v487_v22 = vpop.f32.mrf.mxu1 }
 0x102   : > { %v461_v0 = vpop.f32.mrf.mxu2 }
 0x103   : > { %630 = vmatpush.xpose.msra.mxu3 %v461_v0 }
 0x104   : > { %v431_v1 = vpop.f32.mrf.mxu0 }
 0x106   : > { %v490_v24 = vpop.f32.mrf.mxu1 }
 0x107   : > { %631 = vmatpush.xpose.msra.mxu3 %v458_v58 }
 0x10a   : > { %v595_v16 = vpop.f32.mrf.mxu2 }
 0x10b   : > { %632 = vmatpush.xpose.msra.mxu3 %v455_v54 }
 0x10c   : > { %v434_v6 = vpop.f32.mrf.mxu0 }
 0x10e   : > { %v493_v26 = vpop.f32.mrf.mxu1 }
 0x10f   : > { %633 = vmatpush.xpose.msra.mxu3 %v452_v52 }
 0x113   : > { %634 = vmatpush.xpose.msra.mxu3 %v449_v50 }
 0x114   : > { %v437_v12 = vpop.f32.mrf.mxu0 }
 0x116   : > { %v496_v28 = vpop.f32.mrf.mxu1 }
 0x11c   : > { %v440_v14 = vpop.f32.mrf.mxu0 }
 0x11e   : > { %v499_v29 = vpop.f32.mrf.mxu1 }
 0x124   : > { %v443_v15 = vpop.f32.mrf.mxu0 }
 0x126   : > { %v502_v30 = vpop.f32.mrf.mxu1 }
 0x12c   : > { %v446_v27 = vpop.f32.mrf.mxu0 }
 0x12d   : > { %635 = vmatpush.xpose.msra.mxu3 %v446_v27 }
 0x12e   : > { %v505_v33 = vpop.f32.mrf.mxu1 }
 0x131   : > { %636 = vmatpush.xpose.msra.mxu3 %v443_v15 }
 0x135   : > { %637 = vmatpush.xpose.msra.mxu3 %v440_v14 }
 0x136   : > { %v508_v21 = vpop.f32.mrf.mxu1 }
 0x139   : > { %638 = vmatpush.xpose.msra.mxu3 %v437_v12 }
 0x13d   : > { %639 = vmatpush.xpose.msra.mxu3 %v434_v6 }
 0x13e   : > { %v511_v34 = vpop.f32.mrf.mxu1 }
 0x141   : > { %640 = vmatpush.xpose.msra.mxu3 %v431_v1 }
 0x145   : > { %641 = vmatpush.xpose.msra.mxu3 %v428_v59 }
 0x146   : > { %v514_v23 = vpop.f32.mrf.mxu1 }
 0x149   : > { %642 = vmatpush.xpose.msra.mxu3 %v425_v55 }
 0x14d   : > { %643 = vmatpush.xpose.msra.mxu3 %v1521_v53 }
 0x14e   : > { %v517_v35 = vpop.f32.mrf.mxu1 }
 0x151   : > { %644 = vmatpush.xpose.msra.mxu3 %v1519_v51 }
 0x155   : > { %645 = vmatpush.xpose.msra.mxu3 %v1517_v49 }
 0x156   : > { %v520_v25 = vpop.f32.mrf.mxu1 }
 0x158   : > { %646 = vmatmul.f32.vlgmr.msra.gmra.mxu3 %v595_v16 }
 0x15e   : > { %v523_v36 = vpop.f32.mrf.mxu1 }
 0x166   : > { %v526_v37 = vpop.f32.mrf.mxu1 }
 0x167   : > { %676 = vmatpush.msra.mxu2 %v526_v37 }
 0x169   : > { %677 = vmatpush.msra.mxu2 %v523_v36 }
 0x16b   : > { %678 = vmatpush.msra.mxu2 %v520_v25 }
 0x16d   : > { %679 = vmatpush.msra.mxu2 %v517_v35 }
 0x16f   : > { %680 = vmatpush.msra.mxu2 %v514_v23 }
 0x171   : > { %681 = vmatpush.msra.mxu2 %v511_v34 }
 0x173   : > { %682 = vmatpush.msra.mxu2 %v508_v21 }
 0x175   : > { %683 = vmatpush.msra.mxu2 %v505_v33 }
 0x177   : > { %684 = vmatpush.msra.mxu2 %v502_v30 }
 0x179   : > { %685 = vmatpush.msra.mxu2 %v499_v29 }
 0x17b   : > { %686 = vmatpush.msra.mxu2 %v496_v28 }
 0x17d   : > { %687 = vmatpush.msra.mxu2 %v493_v26 }
 0x17f   : > { %688 = vmatpush.msra.mxu2 %v490_v24 }
 0x181   : > { %689 = vmatpush.msra.mxu2 %v487_v22 }
 0x183   : > { %690 = vmatpush.msra.mxu2 %v484_v20 }
 0x185   : > { %691 = vmatpush.msra.mxu2 %v481_v18 }
 0x1db   : > { %v647_v17 = vpop.f32.mrf.mxu3 }
 0x1dc   : > { %v653_v19 = vsel %vm652_vm0, %v647_v17, -1e+30 }
 0x1dd   : > { %654 = vmax.xlane.f32.xlu0 %v653_v19 }
 0x250   : > { %v655_v38 = vpop.xlane.xlu0 %654 }
 0x251   : > { %v656_v39 = vsub.f32 %v653_v19, %v655_v38 }
 0x253   : > { %v657_v40 = vmul.f32 1.442695, %v656_v39 }
 0x255   : > { %1029 = vpow2.f32 %v657_v40 }
 0x25b   : > { %v1030_v41 = vpop.eup %1029 }
 0x25c   : > { %659 = vadd.xlane.f32.xlu0 %v1030_v41 }
 0x2cf   : > { %v660_v42 = vpop.xlane.xlu0 %659 }
 0x2d0   : > { %1031 = vrcp.f32 %v660_v42  ;;  %v672_v46 = vand.u32 2147483648, %v660_v42  ;;  %v670_v48 = vand.u32 2147483647, %v660_v42  ;;  %vm666_vm2 = vweird.f32 %v660_v42 }
 0x2d2   : > { %v673_v50 = vor.u32 1.1754944e-38, %v672_v46  ;;  %vm671_vm4 = vcmp.eq.f32.partialorder %v670_v48, 8.507059e+37 }
 0x2d6   : > { %v1032_v43 = vpop.eup %1031 }
 0x2d7   : > { %v662_v44 = vmul.f32 %v1032_v43, %v660_v42  ;;  %vm667_vm1 = vweird.f32 %v1032_v43 }
 0x2d8   : > { %vm668_vm3 = vmor %vm666_vm2, %vm667_vm1 }
 0x2d9   : > { %v663_v45 = vsub.f32 1.0, %v662_v44 }
 0x2db   : > { %v664_v47 = vmul.f32 %v1032_v43, %v663_v45 }
 0x2dd   : > { %v665_v49 = vadd.f32 %v1032_v43, %v664_v47 }
 0x2df   : > { %v669_v51 = vsel %vm668_vm3, %v1032_v43, %v665_v49 }
 0x2e0   : > { %v674_v52 = vsel %vm671_vm4, %v673_v50, %v669_v51 }
 0x2e1   : > { %v675_v53 = vmul.f32 %v1030_v41, %v674_v52 }
 0x2e3   : > { %692 = vmatmul.f32.vlgmr.msra.gmra.mxu2 %v675_v53  ;;  %696 = vst [vmem:[%s339_s24] sm:$0xff] %v675_v53 }
 0x2e4   : > { %1180 = shalt.err (!%p1177_p13)
}
 0x2e5   : > { %944 = dma.vmem_to_hbm [thread:$0]  (%p1394_p2), %s718_s26, 128, %s720_s15, %s699_s17  }
 0x2e6   : > { %s730_s28 = scalar_lea.hbm %s1601_s5, %s911_s27  ;;  %s346_s25 = scalar_lea.vmem [#allocation12], %s1427_s10 }
 0x2e7   : > { %s732_s30 = sshll.u32 %s346_s25, 4  ;;  %s734_s24 = sshll.u32 %s730_s28, 4  ;;  %s733_s30 = int_to_ptr.vmem [resolvable:$true] %s732_s30  ;;  %s735_s24 = int_to_ptr.hbm [resolvable:$true] %s734_s24 }
 0x2e8   : > { %s704_s6 = scalar_lea.sflag [#allocation13], %s1424_s2  ;;  %s1195_s7 = sshra.s32 %s735_s24, 4  ;;  %s1196_s7 = int_to_ptr.hbm [resolvable:$true] %s1195_s7 }
 0x2e9   : > { %s1197_s14 = scalar_lea.hbm %s1196_s7, 8  ;;  %s1201_s17 = scalar_lea.hbm %s1601_s5, 16 }
 0x2ea   : > { %p1198_p0 = scmp.ne.s32.totalorder %s1196_s7, %s1197_s14  ;;  %p1202_p8 = scmp.lt.s32.totalorder %s1196_s7, %s1601_s5 }
 0x2eb   : > { %p1203_p1 = scmp.lt.s32.totalorder %s1201_s17, %s1197_s14 }
 0x2ec   : > { %p1199_p4 = pnand %p1198_p0, %p1394_p2 }
 0x2ed   : > { %p1204_p3 = por %p1203_p1, %p1202_p8 }
 0x2ee   : > { %p1200_p7 = pneg %p1199_p4 }
 0x2f0   : > { %p1205_p9 = pnand %p1204_p3, %p1200_p7 }
 0x366   : > { %v693_v54 = vpop.f32.mrf.mxu2 }
 0x367   : > { %697 = vst [vmem:[%s346_s25] sm:$0xff] %v693_v54 }
 0x368   : > { %1208 = shalt.err (!%p1205_p9)
}
 0x369   : > { %945 = dma.vmem_to_hbm [thread:$0]  (%p1394_p2), %s733_s30, 128, %s735_s24, %s704_s6  }
 0x36a PF: > { %s746_s12 = sand.u32 1, %s1259_s18   ;;  %p963_p10 = pnand %p896_p6, %p1401_p5 }
 0x36b   : > { %s747_s8 = scalar_lea.sflag [#allocation5], %s746_s12 }
 0x36c   : > { %p964_p11 = pneg %p963_p10 }
 0x36e   : > { %1250 = dma.done.wait (%p964_p11), %s747_s8, 128  }
 0x36f   : > { %1252 = vsyncadd (%p964_p11), %s747_s8, 4294967168  ;;  %s757_s11 = scalar_lea.sflag [#allocation13], %s746_s12 }
 0x370   : > { %1254 = dma.done.wait (%p964_p11), %s757_s11, 128  }
 0x371   : > { %1256 = vsyncadd (%p964_p11), %s757_s11, 4294967168  ;;  %s29_s23 = sadd.s32 1, %s1279_s23   ;;  %s1623_s29 = sld [smem:[#allocation20_spill]] }
 0x372   : > { %p26_p12 = scmp.ge.s32.totalorder %s29_s23, 4   ;;  %s1624_s20 = sld [smem:[#allocation22_spill]] }
 0x373   : > { %s1625_s9 = sld [smem:[#allocation21_spill]]  ;;  %s1626_s18 = smov %s1263_s19 }
 0x374   : > { %s1628_s21 = smov %s1275_s22 }
 0x375   :  { %28 = sbr.rel (!%p26_p12) target bundleno = 14 (0xe), region = 123 }
 0x377   : > { %s1627_s19 = smov %s1623_s29 }
 0x379   : > { %s1629_s22 = smov %s1625_s9 }
 0x37a   :  { %763 = vsyncpa [#allocation4], 1 }
 0x37b   :  { %765 = vsyncpa [#allocation4 + $0x1], 1 }
 0x37c   :  { %766 = vsyncpa [#allocation7], 1 }
 0x37d   :  { %768 = vsyncpa [#allocation7 + $0x1], 1 }
 0x37e   :  { %769 = vsyncpa [#allocation10], 1 }
 0x37f   :  { %770 = vsyncpa [#allocation5], 1 }
 0x380   :  { %772 = vsyncpa [#allocation5 + $0x1], 1 }
 0x381   :  { %773 = vsyncpa [#allocation13], 1 }
 0x382   :  { %775 = vsyncpa [#allocation13 + $0x1], 1 }

</bundles_post_ra>
